<compile_context>
chip_gen: v6e
topology: v6e:2x2x1
jax: 0.10.0
libtpu: 0.0.40
codegen_flags: <defaults>
</compile_context>

<pallas_src>
import jax
import jax.numpy as jnp
from jax.experimental import pallas as pl
from jax.experimental.pallas import tpu as pltpu

# Channel split at 512 // 2 = 256 is hard-wired in the module; feats = args.feats.
B, C, H, W = 16, 512, 8, 8        # B=16 exercises the batch grid (2 tiles of 8)
HW = H * W
N_CH = 2
CHS = C // N_CH                   # 256
FEATS = 128                       # args.feats (must stay a multiple of 128)
B_TILE = 8                        # (8,128)-aligned output tile; grid = B/B_TILE = 2 (even, v7x-friendly)
HW_CHUNK = 8                      # streaming-pool chunk (one full sublane set per step)
EPS = 1e-5

assert B % B_TILE == 0
assert HW % HW_CHUNK == 0
assert C % 128 == 0 and CHS % 128 == 0 and FEATS % 128 == 0


def channel_branch_kernel(x_ref, w_ref, bn_ref, out_ref):
    """Fused: streaming sum-pool -> shared 1x1 conv (x2 branches) -> BN2d -> ReLU -> BN1d.

    x_ref:   (HW, B_TILE, C)       bf16  spatial-major, lane-dense (C on lanes)
    w_ref:   (CHS, FEATS)          bf16  shared 1x1 conv weight, transposed
    bn_ref:  (8, FEATS)            f32   rows: [sh_scale/(H*W), sh_shift,
                                                bn1_scale0, bn1_shift0,
                                                bn1_scale1, bn1_shift1, 0, 0]
    out_ref: (N_CH, B_TILE, FEATS) f32   after_neck features, branch-major
    """
    # adaptive_avg_pool2d(., (1,1)): streaming f32 accumulation over the spatial axis.
    # Each chunk is (HW_CHUNK, B_TILE, C) bf16 (~64 KiB); the accumulator is a small
    # (B_TILE, C) f32 register tile.  The 1/(H*W) factor is folded into sh_scale.
    pooled = jnp.zeros((B_TILE, C), jnp.float32)
    for s in range(HW // HW_CHUNK):
        chunk = x_ref[pl.ds(s * HW_CHUNK, HW_CHUNK), :, :].astype(jnp.float32)
        pooled = pooled + jnp.sum(chunk, axis=0)

    w = w_ref[...]                                            # staged once, shared by both dots
    sh_scale = bn_ref[0, :]                                   # shared BN2d scale * 1/(H*W)
    sh_shift = bn_ref[1, :]                                   # shared BN2d shift

    # Channel split at 256 = 128-aligned lane slice (free); one matmul per branch,
    # same RHS, direct branch-major stores — no concat / reshape relayout.
    for h in range(N_CH):
        p = pooled[:, h * CHS:(h + 1) * CHS].astype(jnp.bfloat16)          # (B_TILE, CHS)
        z = jnp.dot(p, w, preferred_element_type=jnp.float32)              # (B_TILE, FEATS)
        y = jnp.maximum(z * sh_scale + sh_shift, 0.0)                      # shared BN2d + ReLU
        out_ref[h, :, :] = y * bn_ref[2 + 2 * h, :] + bn_ref[3 + 2 * h, :]  # BNNeck BN1d


def _fold_bn(gamma, beta, mean, var):
    scale = gamma / jnp.sqrt(var + EPS)
    shift = beta - mean * scale
    return scale.astype(jnp.float32), shift.astype(jnp.float32)


def fold_params(params):
    """Hoisted out of the per-call path: eval-mode running stats are constants."""
    sh_scale, sh_shift = _fold_bn(params["sh_gamma"], params["sh_beta"],
                                  params["sh_mean"], params["sh_var"])
    bn1_scale, bn1_shift = _fold_bn(params["bn1_gamma"], params["bn1_beta"],
                                    params["bn1_mean"], params["bn1_var"])
    # Pack all BN vectors into one (8, FEATS) f32 array (single DMA stream in-kernel).
    bn_pack = jnp.stack([
        sh_scale / HW,            # 1/(H*W) folded into the shared-BN scale
        sh_shift,
        bn1_scale[0], bn1_shift[0],
        bn1_scale[1], bn1_shift[1],
        jnp.zeros((FEATS,), jnp.float32),
        jnp.zeros((FEATS,), jnp.float32),
    ], axis=0)
    return {
        "w_bf16": params["w_t"].astype(jnp.bfloat16),   # (CHS, FEATS)
        "bn_pack": bn_pack,                              # (8, FEATS)
    }


def to_producer_layout(x_nchw):
    """Demo-only: NCHW f32 -> spatial-major (HW, B, C) bf16.

    In the real model, backbone2's final op should emit this layout/dtype directly so
    this HBM round-trip (read 2 MiB f32 / write 1 MiB bf16) disappears from the stage.
    """
    return jnp.transpose(x_nchw, (2, 3, 0, 1)).reshape(HW, B, C).astype(jnp.bfloat16)


@jax.jit
def channel_branch_forward(x_hwbc, folded):
    """x_hwbc: (HW, B, C) bf16 (producer layout). Returns (B, FEATS, 2) f32."""
    cost = pl.CostEstimate(
        flops=2 * B * CHS * FEATS * N_CH,
        transcendentals=0,
        bytes_accessed=B * HW * C * 2 + CHS * FEATS * 2 + 8 * FEATS * 4
                       + N_CH * B * FEATS * 4,
    )
    out = pl.pallas_call(
        channel_branch_kernel,
        out_shape=jax.ShapeDtypeStruct((N_CH, B, FEATS), jnp.float32),
        grid_spec=pltpu.PrefetchScalarGridSpec(
            num_scalar_prefetch=0,
            grid=(B // B_TILE,),
            in_specs=[
                pl.BlockSpec((HW, B_TILE, C), lambda i: (0, i, 0)),   # x (tiled over batch)
                pl.BlockSpec((CHS, FEATS), lambda i: (0, 0)),         # shared conv weight
                pl.BlockSpec((8, FEATS), lambda i: (0, 0)),           # packed BN params
            ],
            out_specs=pl.BlockSpec((N_CH, B_TILE, FEATS), lambda i: (0, i, 0)),
        ),
        compiler_params=pltpu.CompilerParams(
            dimension_semantics=("parallel",)),   # even grid -> both TCs busy on v7x
        cost_estimate=cost,
    )(x_hwbc, folded["w_bf16"], folded["bn_pack"])

    # torch.stack([f_c0, f_c1], dim=2) -> (B, FEATS, 2)
    return jnp.transpose(out, (1, 2, 0))


def make_params(key):
    """Deterministic synthetic parameters matching the module's __init__ shapes."""
    k = jax.random.split(key, 8)
    # shared Conv2d(CHS, FEATS, 1, bias=False): weight (FEATS, CHS, 1, 1), kaiming fan_out
    w = jax.random.normal(k[0], (FEATS, CHS), jnp.float32) * jnp.sqrt(2.0 / FEATS)
    # shared BatchNorm2d(FEATS): gamma=1, beta=0; synthetic running stats
    sh_gamma = jnp.ones((FEATS,), jnp.float32)
    sh_beta = jnp.zeros((FEATS,), jnp.float32)
    sh_mean = 0.1 * jax.random.normal(k[1], (FEATS,), jnp.float32)
    sh_var = 0.5 + jnp.abs(jax.random.normal(k[2], (FEATS,), jnp.float32))
    # BNNeck BatchNorm1d(FEATS) x2 (reduction_ch_0 / reduction_ch_1), bias frozen at 0
    bn1_gamma = 1.0 + 0.02 * jax.random.normal(k[3], (N_CH, FEATS), jnp.float32)
    bn1_beta = jnp.zeros((N_CH, FEATS), jnp.float32)
    bn1_mean = 0.1 * jax.random.normal(k[4], (N_CH, FEATS), jnp.float32)
    bn1_var = 0.5 + jnp.abs(jax.random.normal(k[5], (N_CH, FEATS), jnp.float32))
    # NOTE: BNNeck's Linear(FEATS, num_classes) classifier is not needed: in eval the
    # module returns only f[0] (after_neck) from each BNNeck; scores are discarded.
    return {
        "w_t": jnp.transpose(w),          # (CHS, FEATS)
        "sh_gamma": sh_gamma, "sh_beta": sh_beta, "sh_mean": sh_mean, "sh_var": sh_var,
        "bn1_gamma": bn1_gamma, "bn1_beta": bn1_beta,
        "bn1_mean": bn1_mean, "bn1_var": bn1_var,
    }


def reference_forward(x, params):
    """Pure-JAX reference mirroring the PyTorch eval forward.

    Mirrors the kernel's precision policy (x, conv weight, and pooled activations are
    consumed in bf16; accumulation and the BN/ReLU epilogue are f32). Note 1/(H*W) is a
    power of two here, so folding it into sh_scale commutes exactly with the bf16 cast.
    """
    xq = x.astype(jnp.bfloat16).astype(jnp.float32)
    pooled = jnp.mean(xq.reshape(B, C, -1), axis=-1)                 # (B, C)
    w = params["w_t"].astype(jnp.bfloat16).astype(jnp.float32)       # (CHS, FEATS)
    outs = []
    for h in range(N_CH):
        p = pooled[:, h * CHS:(h + 1) * CHS]
        p = p.astype(jnp.bfloat16).astype(jnp.float32)               # bf16 MXU inputs
        y = p @ w
        y = ((y - params["sh_mean"]) / jnp.sqrt(params["sh_var"] + EPS)
             * params["sh_gamma"] + params["sh_beta"])
        y = jnp.maximum(y, 0.0)
        y = ((y - params["bn1_mean"][h]) / jnp.sqrt(params["bn1_var"][h] + EPS)
             * params["bn1_gamma"][h] + params["bn1_beta"][h])
        outs.append(y)
    return jnp.stack(outs, axis=2)                                   # (B, FEATS, 2)


if __name__ == "__main__":
    key = jax.random.PRNGKey(0)
    kx, kp = jax.random.split(key)
    x = jax.random.normal(kx, (B, C, H, W), jnp.float32)   # backbone2 output map
    params = make_params(kp)
    folded = fold_params(params)          # precomputed once (eval constants)
    x_prod = to_producer_layout(x)        # in real use, emitted by backbone2 directly

    out = channel_branch_forward(x_prod, folded)
    out = jax.block_until_ready(out)

    ref = reference_forward(x, params)
    assert out.shape == (B, FEATS, N_CH), out.shape
    err = float(jnp.max(jnp.abs(out - ref)))
    # bf16 inputs / f32 accumulation: differences are reassociation-level only.
    assert err < 1e-3, err
    print("KERNEL_OK")
</pallas_src>

<mosaic_0001>
module attributes {stable_mosaic.version = 11 : i64} {
  func.func @channel_branch_kernel(%arg0: i32, %arg1: memref<64x8x512xbf16, #tpu.memory_space<vmem>>, %arg2: memref<256x128xbf16, #tpu.memory_space<vmem>>, %arg3: memref<8x128xf32, #tpu.memory_space<vmem>>, %arg4: memref<2x8x128xf32, #tpu.memory_space<vmem>>) attributes {dimension_semantics = [#tpu.dimension_semantics<parallel>], iteration_bounds = array<i64: 2>, scalar_prefetch = 0 : i64, scratch_operands = 0 : i64, tpu.core_type = #tpu.core_type<tc>, window_params = [{transform_indices = @transform_0, window_bounds = array<i64: 64, 8, 512>}, {pipeline_mode = #tpu.pipeline_mode<synchronous>, transform_indices = @transform_1, window_bounds = array<i64: 256, 128>}, {pipeline_mode = #tpu.pipeline_mode<synchronous>, transform_indices = @transform_2, window_bounds = array<i64: 8, 128>}, {transform_indices = @transform_3, window_bounds = array<i64: 2, 8, 128>}]} {
    %cst = arith.constant 0.000000e+00 : f32
    %0 = vector.broadcast %cst : f32 to vector<8x512xf32>
    %c0 = arith.constant 0 : index
    %c0_0 = arith.constant 0 : index
    %c0_1 = arith.constant 0 : index
    %1 = vector.load %arg1[%c0, %c0_0, %c0_1] : memref<64x8x512xbf16, #tpu.memory_space<vmem>>, vector<8x8x512xbf16>
    %2 = arith.extf %1 : vector<8x8x512xbf16> to vector<8x8x512xf32>
    %cst_2 = arith.constant dense<0.000000e+00> : vector<8x512xf32>
    %3 = vector.multi_reduction <add>, %2, %cst_2 [0] : vector<8x8x512xf32> to vector<8x512xf32>
    %4 = arith.addf %0, %3 : vector<8x512xf32>
    %c8 = arith.constant 8 : index
    %c0_3 = arith.constant 0 : index
    %c0_4 = arith.constant 0 : index
    %5 = vector.load %arg1[%c8, %c0_3, %c0_4] : memref<64x8x512xbf16, #tpu.memory_space<vmem>>, vector<8x8x512xbf16>
    %6 = arith.extf %5 : vector<8x8x512xbf16> to vector<8x8x512xf32>
    %cst_5 = arith.constant dense<0.000000e+00> : vector<8x512xf32>
    %7 = vector.multi_reduction <add>, %6, %cst_5 [0] : vector<8x8x512xf32> to vector<8x512xf32>
    %8 = arith.addf %4, %7 : vector<8x512xf32>
    %c16 = arith.constant 16 : index
    %c0_6 = arith.constant 0 : index
    %c0_7 = arith.constant 0 : index
    %9 = vector.load %arg1[%c16, %c0_6, %c0_7] : memref<64x8x512xbf16, #tpu.memory_space<vmem>>, vector<8x8x512xbf16>
    %10 = arith.extf %9 : vector<8x8x512xbf16> to vector<8x8x512xf32>
    %cst_8 = arith.constant dense<0.000000e+00> : vector<8x512xf32>
    %11 = vector.multi_reduction <add>, %10, %cst_8 [0] : vector<8x8x512xf32> to vector<8x512xf32>
    %12 = arith.addf %8, %11 : vector<8x512xf32>
    %c24 = arith.constant 24 : index
    %c0_9 = arith.constant 0 : index
    %c0_10 = arith.constant 0 : index
    %13 = vector.load %arg1[%c24, %c0_9, %c0_10] : memref<64x8x512xbf16, #tpu.memory_space<vmem>>, vector<8x8x512xbf16>
    %14 = arith.extf %13 : vector<8x8x512xbf16> to vector<8x8x512xf32>
    %cst_11 = arith.constant dense<0.000000e+00> : vector<8x512xf32>
    %15 = vector.multi_reduction <add>, %14, %cst_11 [0] : vector<8x8x512xf32> to vector<8x512xf32>
    %16 = arith.addf %12, %15 : vector<8x512xf32>
    %c32 = arith.constant 32 : index
    %c0_12 = arith.constant 0 : index
    %c0_13 = arith.constant 0 : index
    %17 = vector.load %arg1[%c32, %c0_12, %c0_13] : memref<64x8x512xbf16, #tpu.memory_space<vmem>>, vector<8x8x512xbf16>
    %18 = arith.extf %17 : vector<8x8x512xbf16> to vector<8x8x512xf32>
    %cst_14 = arith.constant dense<0.000000e+00> : vector<8x512xf32>
    %19 = vector.multi_reduction <add>, %18, %cst_14 [0] : vector<8x8x512xf32> to vector<8x512xf32>
    %20 = arith.addf %16, %19 : vector<8x512xf32>
    %c40 = arith.constant 40 : index
    %c0_15 = arith.constant 0 : index
    %c0_16 = arith.constant 0 : index
    %21 = vector.load %arg1[%c40, %c0_15, %c0_16] : memref<64x8x512xbf16, #tpu.memory_space<vmem>>, vector<8x8x512xbf16>
    %22 = arith.extf %21 : vector<8x8x512xbf16> to vector<8x8x512xf32>
    %cst_17 = arith.constant dense<0.000000e+00> : vector<8x512xf32>
    %23 = vector.multi_reduction <add>, %22, %cst_17 [0] : vector<8x8x512xf32> to vector<8x512xf32>
    %24 = arith.addf %20, %23 : vector<8x512xf32>
    %c48 = arith.constant 48 : index
    %c0_18 = arith.constant 0 : index
    %c0_19 = arith.constant 0 : index
    %25 = vector.load %arg1[%c48, %c0_18, %c0_19] : memref<64x8x512xbf16, #tpu.memory_space<vmem>>, vector<8x8x512xbf16>
    %26 = arith.extf %25 : vector<8x8x512xbf16> to vector<8x8x512xf32>
    %cst_20 = arith.constant dense<0.000000e+00> : vector<8x512xf32>
    %27 = vector.multi_reduction <add>, %26, %cst_20 [0] : vector<8x8x512xf32> to vector<8x512xf32>
    %28 = arith.addf %24, %27 : vector<8x512xf32>
    %c56 = arith.constant 56 : index
    %c0_21 = arith.constant 0 : index
    %c0_22 = arith.constant 0 : index
    %29 = vector.load %arg1[%c56, %c0_21, %c0_22] : memref<64x8x512xbf16, #tpu.memory_space<vmem>>, vector<8x8x512xbf16>
    %30 = arith.extf %29 : vector<8x8x512xbf16> to vector<8x8x512xf32>
    %cst_23 = arith.constant dense<0.000000e+00> : vector<8x512xf32>
    %31 = vector.multi_reduction <add>, %30, %cst_23 [0] : vector<8x8x512xf32> to vector<8x512xf32>
    %32 = arith.addf %28, %31 : vector<8x512xf32>
    %c0_24 = arith.constant 0 : index
    %c0_25 = arith.constant 0 : index
    %33 = vector.load %arg2[%c0_24, %c0_25] : memref<256x128xbf16, #tpu.memory_space<vmem>>, vector<256x128xbf16>
    %c0_26 = arith.constant 0 : index
    %c0_27 = arith.constant 0 : index
    %34 = vector.load %arg3[%c0_26, %c0_27] : memref<8x128xf32, #tpu.memory_space<vmem>>, vector<1x128xf32>
    %35 = vector.shape_cast %34 : vector<1x128xf32> to vector<128xf32>
    %c1 = arith.constant 1 : index
    %c0_28 = arith.constant 0 : index
    %36 = vector.load %arg3[%c1, %c0_28] : memref<8x128xf32, #tpu.memory_space<vmem>>, vector<1x128xf32>
    %37 = vector.shape_cast %36 : vector<1x128xf32> to vector<128xf32>
    %38 = vector.extract_strided_slice %32 {offsets = [0, 0], sizes = [8, 256], strides = [1, 1]} : vector<8x512xf32> to vector<8x256xf32>
    %39 = arith.truncf %38 : vector<8x256xf32> to vector<8x256xbf16>
    %cst_29 = arith.constant dense<0.000000e+00> : vector<8x128xf32>
    %40 = tpu.matmul %39, %33, %cst_29 {dimension_numbers = #tpu.dot_dimension_numbers<[1], [0], [0], [1], [0, 0, 1, 1], [], []>} : vector<8x256xbf16>, vector<256x128xbf16>, vector<8x128xf32> -> vector<8x128xf32>
    %41 = vector.shape_cast %35 : vector<128xf32> to vector<1x128xf32>
    %42 = vector.broadcast %41 : vector<1x128xf32> to vector<8x128xf32>
    %43 = arith.mulf %40, %42 : vector<8x128xf32>
    %44 = vector.shape_cast %37 : vector<128xf32> to vector<1x128xf32>
    %45 = vector.broadcast %44 : vector<1x128xf32> to vector<8x128xf32>
    %46 = arith.addf %43, %45 : vector<8x128xf32>
    %cst_30 = arith.constant 0.000000e+00 : f32
    %47 = vector.broadcast %cst_30 : f32 to vector<8x128xf32>
    %48 = arith.maximumf %46, %47 : vector<8x128xf32>
    %c2 = arith.constant 2 : index
    %c0_31 = arith.constant 0 : index
    %49 = vector.load %arg3[%c2, %c0_31] : memref<8x128xf32, #tpu.memory_space<vmem>>, vector<1x128xf32>
    %50 = vector.shape_cast %49 : vector<1x128xf32> to vector<128xf32>
    %51 = vector.shape_cast %50 : vector<128xf32> to vector<1x128xf32>
    %52 = vector.broadcast %51 : vector<1x128xf32> to vector<8x128xf32>
    %53 = arith.mulf %48, %52 : vector<8x128xf32>
    %c3 = arith.constant 3 : index
    %c0_32 = arith.constant 0 : index
    %54 = vector.load %arg3[%c3, %c0_32] : memref<8x128xf32, #tpu.memory_space<vmem>>, vector<1x128xf32>
    %55 = vector.shape_cast %54 : vector<1x128xf32> to vector<128xf32>
    %56 = vector.shape_cast %55 : vector<128xf32> to vector<1x128xf32>
    %57 = vector.broadcast %56 : vector<1x128xf32> to vector<8x128xf32>
    %58 = arith.addf %53, %57 : vector<8x128xf32>
    %c0_33 = arith.constant 0 : index
    %c0_34 = arith.constant 0 : index
    %c0_35 = arith.constant 0 : index
    %59 = vector.load %arg4[%c0_33, %c0_34, %c0_35] : memref<2x8x128xf32, #tpu.memory_space<vmem>>, vector<1x8x128xf32>
    %60 = vector.shape_cast %59 : vector<1x8x128xf32> to vector<8x128xf32>
    %61 = vector.shape_cast %58 : vector<8x128xf32> to vector<1x8x128xf32>
    tpu.vector_store %arg4[%c0_33, %c0_34, %c0_35], %61 {strides = array<i32>} : memref<2x8x128xf32, #tpu.memory_space<vmem>>, vector<1x8x128xf32>,
    %62 = vector.extract_strided_slice %32 {offsets = [0, 256], sizes = [8, 256], strides = [1, 1]} : vector<8x512xf32> to vector<8x256xf32>
    %63 = arith.truncf %62 : vector<8x256xf32> to vector<8x256xbf16>
    %cst_36 = arith.constant dense<0.000000e+00> : vector<8x128xf32>
    %64 = tpu.matmul %63, %33, %cst_36 {dimension_numbers = #tpu.dot_dimension_numbers<[1], [0], [0], [1], [0, 0, 1, 1], [], []>} : vector<8x256xbf16>, vector<256x128xbf16>, vector<8x128xf32> -> vector<8x128xf32>
    %65 = vector.shape_cast %35 : vector<128xf32> to vector<1x128xf32>
    %66 = vector.broadcast %65 : vector<1x128xf32> to vector<8x128xf32>
    %67 = arith.mulf %64, %66 : vector<8x128xf32>
    %68 = vector.shape_cast %37 : vector<128xf32> to vector<1x128xf32>
    %69 = vector.broadcast %68 : vector<1x128xf32> to vector<8x128xf32>
    %70 = arith.addf %67, %69 : vector<8x128xf32>
    %cst_37 = arith.constant 0.000000e+00 : f32
    %71 = vector.broadcast %cst_37 : f32 to vector<8x128xf32>
    %72 = arith.maximumf %70, %71 : vector<8x128xf32>
    %c4 = arith.constant 4 : index
    %c0_38 = arith.constant 0 : index
    %73 = vector.load %arg3[%c4, %c0_38] : memref<8x128xf32, #tpu.memory_space<vmem>>, vector<1x128xf32>
    %74 = vector.shape_cast %73 : vector<1x128xf32> to vector<128xf32>
    %75 = vector.shape_cast %74 : vector<128xf32> to vector<1x128xf32>
    %76 = vector.broadcast %75 : vector<1x128xf32> to vector<8x128xf32>
    %77 = arith.mulf %72, %76 : vector<8x128xf32>
    %c5 = arith.constant 5 : index
    %c0_39 = arith.constant 0 : index
    %78 = vector.load %arg3[%c5, %c0_39] : memref<8x128xf32, #tpu.memory_space<vmem>>, vector<1x128xf32>
    %79 = vector.shape_cast %78 : vector<1x128xf32> to vector<128xf32>
    %80 = vector.shape_cast %79 : vector<128xf32> to vector<1x128xf32>
    %81 = vector.broadcast %80 : vector<1x128xf32> to vector<8x128xf32>
    %82 = arith.addf %77, %81 : vector<8x128xf32>
    %c1_40 = arith.constant 1 : index
    %c0_41 = arith.constant 0 : index
    %c0_42 = arith.constant 0 : index
    %83 = vector.load %arg4[%c1_40, %c0_41, %c0_42] : memref<2x8x128xf32, #tpu.memory_space<vmem>>, vector<1x8x128xf32>
    %84 = vector.shape_cast %83 : vector<1x8x128xf32> to vector<8x128xf32>
    %85 = vector.shape_cast %82 : vector<8x128xf32> to vector<1x8x128xf32>
    tpu.vector_store %arg4[%c1_40, %c0_41, %c0_42], %85 {strides = array<i32>} : memref<2x8x128xf32, #tpu.memory_space<vmem>>, vector<1x8x128xf32>,
    return
  }
  func.func @transform_0(%arg0: i32) -> (i32, i32, i32) {
    %c0_i32 = arith.constant 0 : i32
    %c0_i32_0 = arith.constant 0 : i32
    %c0_i32_1 = arith.constant 0 : i32
    return %c0_i32, %arg0, %c0_i32_0 : i32, i32, i32
  }
  func.func @transform_1(%arg0: i32) -> (i32, i32) {
    %c0_i32 = arith.constant 0 : i32
    %c0_i32_0 = arith.constant 0 : i32
    %c0_i32_1 = arith.constant 0 : i32
    return %c0_i32, %c0_i32_0 : i32, i32
  }
  func.func @transform_2(%arg0: i32) -> (i32, i32) {
    %c0_i32 = arith.constant 0 : i32
    %c0_i32_0 = arith.constant 0 : i32
    %c0_i32_1 = arith.constant 0 : i32
    return %c0_i32, %c0_i32_0 : i32, i32
  }
  func.func @transform_3(%arg0: i32) -> (i32, i32, i32) {
    %c0_i32 = arith.constant 0 : i32
    %c0_i32_0 = arith.constant 0 : i32
    %c0_i32_1 = arith.constant 0 : i32
    return %c0_i32, %arg0, %c0_i32_0 : i32, i32, i32
  }
}

</mosaic_0001>

<bundles_post_ra>
// kernel: channel_branch_forward.1
= control target key start
LH: loop header
LB: loop body
LE: loop exit
PB: predicated region body
PF: predicated region fallthrough
CT: control target
= control target key end

     0   :  { %8 = vsyncpa [#allocation3], 0  ;;  %s2712_s0 = inlined_call_operand.hbm [shape: bf16[64,16,512], index: 0, kind: input, shape index: {}]   ;;  %s2713_s1 = inlined_call_operand.hbm [shape: bf16[256,128], index: 1, kind: input, shape index: {}]   ;;  %s2714_s2 = inlined_call_operand.hbm [shape: f32[8,128], index: 2, kind: input, shape index: {}]   ;;  %s2715_s3 = inlined_call_operand.vmem [shape: f32[2,16,128], index: 3, kind: output, shape index: {}]  }
   0x1   :  { %10 = vsyncpa [#allocation3 + $0x1], 0 }
   0x2   :  { %11 = vsyncpa [#allocation5], 0  ;;  %s1668_s12 = smov 0   ;;  %s1670_s13 = smov 0  }
   0x3   :  { %s1672_s14 = smov 0   ;;  %s1674_s15 = smov 0  }
   0x4 LB: > { %s1687_s16 = sadd.s32 4294967295, %s1638_s15   ;;  %s1690_s17 = sadd.s32 1, %s1638_s15   ;;  %s1638_s15 = sphi %s1674_s15, %s3133_s15   ;;  %s1634_s14 = sphi %s1672_s14, %s3132_s14   ;;  %s1630_s13 = sphi %s1670_s13, %s3131_s13   ;;  %s1626_s12 = sphi %s1668_s12, %s3130_s12  }
   0x5   : > { %s21_s18 = ssub.s32 %s1638_s15, %s1690_s17  ;;  %s24_s19 = sadd.s32 1, %s1634_s14 }
   0x6   : > { %p22_p0 = scmp.eq.s32.totalorder %s21_s18, 0  ;;  %p31_p1 = scmp.ne.s32.totalorder %s1634_s14, %s1630_s13 }
   0x7   : > { %p32_p2 = scmp.eq.s32.totalorder %s1638_s15, 0  ;;  %p37_p3 = scmp.ne.s32.totalorder %s1630_s13, %s1626_s12 }
   0x8   : > { %s1700_s20 = scalar_select %p22_p0, %s1634_s14, %s24_s19  }
   0x9   : > { %p1702_p4 = por %p32_p2, %p31_p1  ;;  %p2716_p5 = scmp.eq.s32.totalorder %s1687_s16, 0 }
   0xa   : > { %p103_p6 = scmp.eq.s32.totalorder %s1687_s16, 1  ;;  %p1243_p7 = scmp.ge.s32.totalorder %s1638_s15, 1 }
   0xb   : > { %p1711_p8 = por %p2716_p5, %p37_p3  ;;  %p116_p9 = scmp.lt.s32.totalorder %s1638_s15, 3 }
   0xc   : > { %p1716_p10 = por %p103_p6, %p31_p1  ;;  %s1640_s25 = smov [#allocation4]  }
   0xd   : > { %s2813_s22 = scalar_select %p1711_p8, 1, 0 }
   0xe   : > { %s2814_s23 = scalar_select %p1716_p10, 1, 0 }
   0xf   : > { %p1720_p11 = pnand %p1243_p7, %p116_p9  ;;  %s128_s26 = sshll.u32 %s1640_s25, 4  ;;  %s129_s26 = int_to_ptr.vmem [resolvable:$true] %s128_s26 }
  0x10   : > { %p1462_p0 = scmp.lt.s32.totalorder %s1638_s15, 2  ;;  %s153_s28 = sand.u32 1, %s1634_s14  }
  0x11   : > { %s2815_s24 = scalar_select %p1720_p11, 1, 0 }
  0x12   : > { %p1449_p12 = pneg %p1720_p11  ;;  %p1736_p1 = pnand %p1462_p0, %p1702_p4 }
  0x13   : > { %s1531_s30 = scalar_lea.vmem %s129_s26, 2048  ;;  %p1539_p9 = scmp.lt.s32.totalorder %s129_s26, %s129_s26 }
  0x14   : > { %p1728_p13 = pnand %p1449_p12, %p2716_p5  ;;  %p1532_p3 = scmp.ne.s32.totalorder %s129_s26, %s1531_s30 }
  0x15   : > { %p1540_p12 = scmp.lt.s32.totalorder %s1531_s30, %s1531_s30 }
  0x16   : > { %p1522_p2 = pneg %p1728_p13 }
  0x17   : > { %p1541_p5 = por %p1540_p12, %p1539_p9 }
  0x18   : > { %p1534_p6 = pnand %p1532_p3, %p1522_p2 }
  0x1a   : > { %p1535_p7 = pneg %p1534_p6 }
  0x1c   : > { %p1542_p10 = pnand %p1541_p5, %p1535_p7 }
  0x1e   : > { %1545 = shalt.err (!%p1542_p10)
}
  0x1f   : > { %s1641_s4 = smov 64   ;;  %s1642_s5 = smov 4  }
  0x20   : > { %1452 = dma.hbm_to_vmem [thread:$0]  (!%p1728_p13), %s2713_s1, 2048, %s129_s26, [#allocation5], %s1641_s4, %s1641_s4, %s1642_s5  }
  0x21   : > { %s1643_s8 = smov [#allocation6]  }
  0x22   : > { %s142_s9 = sshll.u32 %s1643_s8, 4  ;;  %s143_s9 = int_to_ptr.vmem [resolvable:$true] %s142_s9 }
  0x23   : > { %s1557_s10 = scalar_lea.vmem %s143_s9, 128  ;;  %p1565_p5 = scmp.lt.s32.totalorder %s143_s9, %s143_s9 }
  0x24   : > { %p1558_p4 = scmp.ne.s32.totalorder %s143_s9, %s1557_s10  ;;  %p1566_p10 = scmp.lt.s32.totalorder %s1557_s10, %s1557_s10 }
  0x26   : > { %p1560_p0 = pnand %p1558_p4, %p1522_p2  ;;  %p1567_p6 = por %p1566_p10, %p1565_p5 }
  0x28   : > { %p1561_p3 = pneg %p1560_p0 }
  0x2a   : > { %p1568_p7 = pnand %p1567_p6, %p1561_p3 }
  0x2c   : > { %1571 = shalt.err (!%p1568_p7)
}
  0x2d   : > { %1455 = dma.hbm_to_vmem [thread:$0]  (!%p1728_p13), %s2714_s2, 128, %s143_s9, [#allocation5]  }
  0x2e   : > { %s1247_s18 = sshll.u32 %s153_s28, 10  ;;  %s1394_s19 = sshll.u32 %s1638_s15, 8 }
  0x2f   : > { %s1764_s26 = scalar_lea.hbm %s2712_s0, %s1394_s19  ;;  %s157_s27 = scalar_lea.vmem [#allocation2], %s1247_s18 }
  0x30   : > { %s164_s30 = sshll.u32 %s157_s27, 4  ;;  %s1770_s4 = scalar_lea.sflag [#allocation3], %s153_s28  ;;  %s1766_s30 = int_to_ptr.vmem [resolvable:$true] %s164_s30 }
  0x31   : > { %s1572_s5 = scalar_lea.hbm %s1764_s26, 16384  ;;  %p1574_p2 = pneg %p1736_p1 }
  0x32   : > { %p1573_p13 = scmp.ne.s32.totalorder %s1764_s26, %s1572_s5  ;;  %s1577_s7 = scalar_lea.hbm %s2712_s0, 32768 }
  0x33   : > { %p1578_p4 = scmp.lt.s32.totalorder %s1764_s26, %s2712_s0  ;;  %p1579_p0 = scmp.lt.s32.totalorder %s1577_s7, %s1572_s5 }
  0x34   : > { %p1575_p9 = pnand %p1574_p2, %p1573_p13 }
  0x35   : > { %p1580_p3 = por %p1579_p0, %p1578_p4 }
  0x36   : > { %p1576_p12 = pneg %p1575_p9 }
  0x38   : > { %p1581_p5 = pnand %p1580_p3, %p1576_p12 }
  0x3a   : > { %1584 = shalt.err (!%p1581_p5)
}
  0x3b   : > { %s1585_s28 = scalar_lea.vmem %s1766_s30, 16384  ;;  %s1644_s10 = smov [#allocation2]  }
  0x3c   : > { %p1586_p10 = scmp.ne.s32.totalorder %s1766_s30, %s1585_s28  ;;  %s1590_s11 = sshll.u32 %s1644_s10, 4  ;;  %s1591_s11 = int_to_ptr.vmem [resolvable:$false] %s1590_s11 }
  0x3d   : > { %s1592_s12 = scalar_lea.vmem %s1591_s11, 32768  ;;  %p1593_p13 = scmp.lt.s32.totalorder %s1766_s30, %s1591_s11 }
  0x3e   : > { %p1588_p6 = pnand %p1586_p10, %p1574_p2  ;;  %p1594_p9 = scmp.lt.s32.totalorder %s1592_s12, %s1585_s28 }
  0x40   : > { %p1589_p7 = pneg %p1588_p6  ;;  %p1595_p8 = por %p1594_p9, %p1593_p13 }
  0x42   : > { %p1596_p11 = pnand %p1595_p8, %p1589_p7 }
  0x44   : > { %1599 = shalt.err (!%p1596_p11)
}
  0x45   : > { %s1645_s18 = smov 512   ;;  %s1646_s19 = smov 256  }
  0x46   : > { %s1647_s21 = smov 16   ;;  %p2818_p2 = scmp.ne.s32.totalorder %s2815_s24, 0 }
  0x47   : > { %1459 = dma.hbm_to_vmem [thread:$0]  (!%p1736_p1), %s1764_s26, 16384, %s1766_s30, %s1770_s4, %s1645_s18, %s1646_s19, %s1647_s21  }
  0x48   : > { %176 = sbr.rel (%p2818_p2) target bundleno = 467 (0x1d3), region = 32 }
  0x4d   : > { %s1794_s25 = sand.u32 1, %s1630_s13   ;;  %p2819_p8 = scmp.ne.s32.totalorder %s2813_s22, 0 }
  0x4e   : > { %s1251_s27 = sshll.u32 %s1794_s25, 10  ;;  %s179_s5 = scalar_lea.sflag [#allocation3], %s1794_s25 }
  0x4f   : > { %s1798_s15 = scalar_lea.vmem [#allocation2], %s1251_s27 }
  0x50   : > { %1617 = dma.done.wait (%p2819_p8), %s179_s5, 16384  }
  0x51   : > { %1619 = vsyncadd (%p2819_p8), %s179_s5, 4294950912  ;;  %p2820_p11 = scmp.eq.s32.totalorder %s1687_s16, 0 }
  0x53   : > { %1621 = dma.done.wait (%p2820_p11), [#allocation5], 2176   ;;  %p2821_p1 = pmov %p2820_p11 }
  0x54   : > { %v1504_v0 = vld [vmem:[#allocation4 + $0x78] sm:$0xff]   ;;  %v1506_v2 = vld [vmem:[#allocation4 + $0x70] sm:$0xff]   ;;  %v1508_v4 = vld [vmem:[#allocation4 + $0x68] sm:$0xff]   ;;  %s1254_s22 = sshll.u32 %s1794_s25, 4  ;;  %p3129_p12 = scmp.ne.s32.totalorder %s2814_s23, 0 }
  0x55   : > { %1623 = vsyncadd (%p2821_p1), [#allocation5], 4294965120  ;;  %v1505_v1 = vld [vmem:[#allocation4 + $0x38] sm:$0xff]   ;;  %1395 = vmatprep.subr.bf16.mxu0 %v1504_v0  ;;  %1417 = vmatprep.subr.bf16.mxu1 %v1504_v0  ;;  %v1507_v3 = vld [vmem:[#allocation4 + $0x30] sm:$0xff]   ;;  %s211_s24 = scalar_lea.vmem [#allocation7], %s1254_s22  ;;  %s1391_s29 = sshll.u32 (%p3129_p12), %s1687_s16, 3 }
  0x56   : > { %1396 = vmatpush3.bf16.msra.mxu0 %v1505_v1  ;;  %1418 = vmatpush3.bf16.msra.mxu1 %v1505_v1  ;;  %v1509_v5 = vld [vmem:[#allocation4 + $0x28] sm:$0xff]   ;;  %v1510_v6 = vld [vmem:[#allocation4 + $0x60] sm:$0xff]   ;;  %v1512_v8 = vld [vmem:[#allocation4 + $0x58] sm:$0xff]   ;;  %s1123_s4 = scalar_lea.vmem (%p3129_p12), %s2715_s3, %s1391_s29 }
  0x57   : > { %1397 = vmatprep.subr.bf16.mxu0 %v1506_v2  ;;  %1419 = vmatprep.subr.bf16.mxu1 %v1506_v2  ;;  %v1511_v7 = vld [vmem:[#allocation4 + $0x20] sm:$0xff]   ;;  %v1513_v9 = vld [vmem:[#allocation4 + $0x18] sm:$0xff]   ;;  %v1514_v10 = vld [vmem:[#allocation4 + $0x50] sm:$0xff]  }
  0x58   : > { %v1809_v11 = vld [vmem:[%s1798_s15] sm:$0xff]  ;;  %v1812_v12 = vld [vmem:[%s1798_s15 + $0x10] sm:$0xff]  ;;  %v1516_v25 = vld [vmem:[#allocation4 + $0x48] sm:$0xff]  }
  0x59   : > { %v1815_v13 = vld [vmem:[%s1798_s15 + $0x20] sm:$0xff]  ;;  %v1818_v14 = vld [vmem:[%s1798_s15 + $0x30] sm:$0xff]  ;;  %v230_v15 = vunpack.c.h.bf16 %v1809_v11  ;;  %v234_v16 = vunpack.c.h.bf16 %v1812_v12  ;;  %v1517_v41 = vld [vmem:[#allocation4 + $0x8] sm:$0xff]  }
  0x5a   : > { %1398 = vmatpush3.bf16.msra.mxu0 %v1507_v3  ;;  %1420 = vmatpush3.bf16.msra.mxu1 %v1507_v3  ;;  %v1515_v17 = vld [vmem:[#allocation4 + $0x10] sm:$0xff]   ;;  %v1823_v18 = vld [vmem:[%s1798_s15 + $0x40] sm:$0xff]  ;;  %v238_v23 = vunpack.c.h.bf16 %v1815_v13  ;;  %v242_v30 = vunpack.c.h.bf16 %v1818_v14 }
  0x5b   : > { %1399 = vmatprep.subr.bf16.mxu0 %v1508_v4  ;;  %1421 = vmatprep.subr.bf16.mxu1 %v1508_v4  ;;  %v1826_v19 = vld [vmem:[%s1798_s15 + $0x80] sm:$0xff]  ;;  %v1829_v20 = vld [vmem:[%s1798_s15 + $0x50] sm:$0xff]  ;;  %v246_v33 = vunpack.c.h.bf16 %v1823_v18  ;;  %v268_v34 = vadd.f32 %v234_v16, %v230_v15 }
  0x5c   : > { %v1832_v21 = vld [vmem:[%s1798_s15 + $0x60] sm:$0xff]  ;;  %v1837_v24 = vld [vmem:[%s1798_s15 + $0x90] sm:$0xff]  ;;  %v311_v35 = vunpack.c.h.bf16 %v1826_v19  ;;  %v250_v37 = vunpack.c.h.bf16 %v1829_v20 }
  0x5d   : > { %2822 = vst [vmem:[#allocation10_spill] sm:$0xff] %v1832_v21  ;;  %v1840_v26 = vld [vmem:[%s1798_s15 + $0x70] sm:$0xff]  ;;  %v1847_v31 = vld [vmem:[%s1798_s15 + $0xa0] sm:$0xff]  ;;  %v315_v40 = vunpack.c.h.bf16 %v1837_v24  ;;  %v254_v42 = vunpack.c.h.bf16 %v1832_v21  ;;  %v269_v44 = vadd.f32 %v268_v34, %v238_v23 }
  0x5e   : > { %1400 = vmatpush3.bf16.msra.mxu0 %v1509_v5  ;;  %1422 = vmatpush3.bf16.msra.mxu1 %v1509_v5  ;;  %2823 = vst [vmem:[#allocation11_spill] sm:$0xff] %v1840_v26  ;;  %v1856_v39 = vld [vmem:[%s1798_s15 + $0xb0] sm:$0xff]  ;;  %v1862_v45 = vld [vmem:[%s1798_s15 + $0xc0] sm:$0xff]  ;;  %v319_v47 = vunpack.c.h.bf16 %v1847_v31  ;;  %v258_v49 = vunpack.c.h.bf16 %v1840_v26 }
  0x5f   : > { %1401 = vmatprep.subr.bf16.mxu0 %v1510_v6  ;;  %1423 = vmatprep.subr.bf16.mxu1 %v1510_v6  ;;  %v1865_v46 = vld [vmem:[%s1798_s15 + $0xd0] sm:$0xff]  ;;  %v1518_v48 = vld [vmem:[#allocation4 + $0x40] sm:$0xff]   ;;  %v270_v55 = vadd.f32 %v269_v44, %v242_v30  ;;  %v323_v59 = vunpack.c.h.bf16 %v1856_v39  ;;  %v349_v60 = vadd.f32 %v315_v40, %v311_v35  ;;  %v327_v62 = vunpack.c.h.bf16 %v1862_v45 }
  0x60   : > { %v1873_v53 = vld [vmem:[%s1798_s15 + $0x100] sm:$0xff]  ;;  %v1876_v54 = vld [vmem:[%s1798_s15 + $0x110] sm:$0xff]  ;;  %v331_v0 = vunpack.c.h.bf16 %v1865_v46 }
  0x61   : > { %v1879_v56 = vld [vmem:[%s1798_s15 + $0xe0] sm:$0xff]  ;;  %v1882_v57 = vld [vmem:[%s1798_s15 + $0xf0] sm:$0xff]  ;;  %v271_v3 = vadd.f32 %v270_v55, %v246_v33  ;;  %v350_v4 = vadd.f32 %v349_v60, %v319_v47  ;;  %v392_v6 = vunpack.c.h.bf16 %v1873_v53 }
  0x62   : > { %1402 = vmatpush3.bf16.msra.mxu0 %v1511_v7  ;;  %1424 = vmatpush3.bf16.msra.mxu1 %v1511_v7  ;;  %2824 = vst [vmem:[#allocation12_spill] sm:$0xff] %v1879_v56  ;;  %2825 = vst [vmem:[#allocation13_spill] sm:$0xff] %v1882_v57  ;;  %v1891_v1 = vld [vmem:[%s1798_s15 + $0x120] sm:$0xff]  ;;  %v1894_v5 = vld [vmem:[%s1798_s15 + $0x130] sm:$0xff]  ;;  %v396_v7 = vunpack.c.h.bf16 %v1876_v54  ;;  %v339_v15 = vunpack.c.h.bf16 %v1882_v57 }
  0x63   : > { %1403 = vmatprep.subr.bf16.mxu0 %v1512_v8  ;;  %1425 = vmatprep.subr.bf16.mxu1 %v1512_v8  ;;  %v1519_v2 = vld [vmem:[#allocation4] sm:$0xff]   ;;  %v351_v23 = vadd.f32 %v350_v4, %v323_v59  ;;  %v400_v34 = vunpack.c.h.bf16 %v1891_v1  ;;  %v404_v44 = vunpack.c.h.bf16 %v1894_v5  ;;  %v1924_v55 = vld [vmem:[%s1798_s15 + $0x170] sm:$0xff] }
  0x64   : > { %v1903_v16 = vld [vmem:[%s1798_s15 + $0x140] sm:$0xff]  ;;  %2827 = vst [vmem:[#allocation15_spill] sm:$0xff] %v1924_v55  ;;  %v1977_v28 = vld [vmem:[%s1798_s15 + $0x230] sm:$0xff] }
  0x65   : > { %v1909_v30 = vld [vmem:[%s1798_s15 + $0x160] sm:$0xff]  ;;  %v408_v60 = vunpack.c.h.bf16 %v1903_v16  ;;  %v566_v51 = vunpack.c.h.bf16 %v1977_v28  ;;  %v2017_v22 = vld [vmem:[%s1798_s15 + $0x2b0] sm:$0xff] }
  0x66   : > { %1404 = vmatpush3.bf16.msra.mxu0 %v1513_v9  ;;  %1426 = vmatpush3.bf16.msra.mxu1 %v1513_v9  ;;  %v335_v9 = vunpack.c.h.bf16 %v1879_v56  ;;  %2826 = vst [vmem:[#allocation14_spill] sm:$0xff] %v1909_v30  ;;  %v1918_v47 = vld [vmem:[%s1798_s15 + $0x180] sm:$0xff]  ;;  %v647_v26 = vunpack.c.h.bf16 %v2017_v22 }
  0x67   : > { %1405 = vmatprep.subr.bf16.mxu0 %v1514_v10  ;;  %1427 = vmatprep.subr.bf16.mxu1 %v1514_v10  ;;  %v1932_v38 = vld [vmem:[%s1798_s15 + $0x1a0] sm:$0xff]  ;;  %v473_v63 = vunpack.c.h.bf16 %v1918_v47 }
  0x68   : > { %v1950_v8 = vld [vmem:[%s1798_s15 + $0x1e0] sm:$0xff]  ;;  %v481_v59 = vunpack.c.h.bf16 %v1932_v38 }
  0x69   : > { %2829 = vst [vmem:[#allocation17_spill] sm:$0xff] %v1950_v8  ;;  %v1974_v52 = vld [vmem:[%s1798_s15 + $0x220] sm:$0xff] }
  0x6a   : > { %1406 = vmatpush3.bf16.msra.mxu0 %v1515_v17  ;;  %1428 = vmatpush3.bf16.msra.mxu1 %v1515_v17  ;;  %v272_v17 = vadd.f32 %v271_v3, %v250_v37  ;;  %v1921_v37 = vld [vmem:[%s1798_s15 + $0x190] sm:$0xff]  ;;  %v430_v3 = vadd.f32 %v396_v7, %v392_v6  ;;  %v420_v7 = vunpack.c.h.bf16 %v1924_v55  ;;  %v1992_v40 = vld [vmem:[%s1798_s15 + $0x260] sm:$0xff] }
  0x6b   : > { %1407 = vmatprep.subr.bf16.mxu0 %v1516_v25  ;;  %1429 = vmatprep.subr.bf16.mxu1 %v1516_v25  ;;  %v1906_v25 = vld [vmem:[%s1798_s15 + $0x150] sm:$0xff]  ;;  %v477_v36 = vunpack.c.h.bf16 %v1921_v37  ;;  %2832 = vst [vmem:[#allocation20_spill] sm:$0xff] %v1992_v40  ;;  %v2014_v27 = vld [vmem:[%s1798_s15 + $0x2a0] sm:$0xff] }
  0x6c   : > { %v273_v4 = vadd.f32 %v272_v17, %v254_v42  ;;  %v412_v43 = vunpack.c.h.bf16 %v1906_v25  ;;  %v416_v42 = vunpack.c.h.bf16 %v1909_v30  ;;  %v1943_v17 = vld [vmem:[%s1798_s15 + $0x1c0] sm:$0xff]  ;;  %v643_v55 = vunpack.c.h.bf16 %v2014_v27  ;;  %v2057_v30 = vld [vmem:[%s1798_s15 + $0x330] sm:$0xff] }
  0x6d   : > { %v489_v29 = vunpack.c.h.bf16 %v1943_v17  ;;  %v2032_v50 = vld [vmem:[%s1798_s15 + $0x2e0] sm:$0xff]  ;;  %2841 = vst [vmem:[#allocation29_spill] sm:$0xff] %v2057_v30 }
  0x6e   : > { %1408 = vmatpush3.bf16.msra.mxu0 %v1517_v41  ;;  %1430 = vmatpush3.bf16.msra.mxu1 %v1517_v41  ;;  %v274_v6 = vadd.f32 %v273_v4, %v258_v49  ;;  %v1966_v41 = vld [vmem:[%s1798_s15 + $0x1f0] sm:$0xff]  ;;  %v511_v49 = vadd.f32 %v477_v36, %v473_v63  ;;  %v497_v36 = vunpack.c.h.bf16 %v1950_v8  ;;  %2836 = vst [vmem:[#allocation24_spill] sm:$0xff] %v2032_v50  ;;  %v2054_v8 = vld [vmem:[%s1798_s15 + $0x320] sm:$0xff] }
  0x6f   : > { %1409 = vmatprep.subr.bf16.mxu0 %v1518_v48  ;;  %1431 = vmatprep.subr.bf16.mxu1 %v1518_v48  ;;  %v352_v48 = vadd.f32 %v351_v23, %v327_v62  ;;  %v1935_v23 = vld [vmem:[%s1798_s15 + $0x1b0] sm:$0xff]  ;;  %2830 = vst [vmem:[#allocation18_spill] sm:$0xff] %v1966_v41  ;;  %2840 = vst [vmem:[#allocation28_spill] sm:$0xff] %v2054_v8 }
  0x71   : > { %v353_v62 = vadd.f32 %v352_v48, %v331_v0  ;;  %v562_v0 = vunpack.c.h.bf16 %v1974_v52 }
  0x72   : > { %1410 = vmatpush3.bf16.msra.mxu0 %v1519_v2  ;;  %1432 = vmatpush3.bf16.msra.mxu1 %v1519_v2  ;;  %v431_v2 = vadd.f32 %v430_v3, %v400_v34  ;;  %v1947_v3 = vld [vmem:[%s1798_s15 + $0x1d0] sm:$0xff] }
  0x73   : > { %v354_v34 = vadd.f32 %v353_v62, %v335_v9  ;;  %2828 = vst [vmem:[#allocation16_spill] sm:$0xff] %v1947_v3  ;;  %v485_v9 = vunpack.c.h.bf16 %v1935_v23  ;;  %v1963_v62 = vld [vmem:[%s1798_s15 + $0x210] sm:$0xff]  ;;  %v493_v32 = vunpack.c.h.bf16 %v1947_v3 }
  0x74   : > { %v432_v48 = vadd.f32 %v431_v2, %v404_v44  ;;  %v1960_v44 = vld [vmem:[%s1798_s15 + $0x200] sm:$0xff]  ;;  %v558_v10 = vunpack.c.h.bf16 %v1963_v62 }
  0x75   : > { %v355_v4 = vadd.f32 %v354_v34, %v339_v15  ;;  %v554_v58 = vunpack.c.h.bf16 %v1960_v44  ;;  %v501_v15 = vunpack.c.h.bf16 %v1966_v41  ;;  %v1985_v34 = vld [vmem:[%s1798_s15 + $0x240] sm:$0xff] }
  0x76   : > { %v433_v2 = vadd.f32 %v432_v48, %v408_v60  ;;  %v512_v48 = vadd.f32 %v511_v49, %v481_v59  ;;  %v1989_v49 = vld [vmem:[%s1798_s15 + $0x250] sm:$0xff]  ;;  %v570_v61 = vunpack.c.h.bf16 %v1985_v34 }
  0x77   : > { %2831 = vst [vmem:[#allocation19_spill] sm:$0xff] %v1989_v49  ;;  %v371_v35 = vadd.f32 %v355_v4, %v274_v6  ;;  %v592_v6 = vadd.f32 %v558_v10, %v554_v58  ;;  %v574_v33 = vunpack.c.h.bf16 %v1989_v49  ;;  %v578_v58 = vunpack.c.h.bf16 %v1992_v40  ;;  %v2072_v40 = vld [vmem:[%s1798_s15 + $0x360] sm:$0xff] }
  0x78   : > { %v434_v60 = vadd.f32 %v433_v2, %v412_v43  ;;  %v513_v2 = vadd.f32 %v512_v48, %v485_v9  ;;  %v2000_v43 = vld [vmem:[%s1798_s15 + $0x280] sm:$0xff]  ;;  %2844 = vst [vmem:[#allocation32_spill] sm:$0xff] %v2072_v40 }
  0x79   : > { %v635_v48 = vunpack.c.h.bf16 %v2000_v43 }
  0x7a   : > { %v435_v59 = vadd.f32 %v434_v60, %v416_v42  ;;  %v2003_v42 = vld [vmem:[%s1798_s15 + $0x290] sm:$0xff]  ;;  %v514_v9 = vadd.f32 %v513_v2, %v489_v29  ;;  %v593_v2 = vadd.f32 %v592_v6, %v562_v0 }
  0x7b   : > { %v2006_v60 = vld [vmem:[%s1798_s15 + $0x270] sm:$0xff]  ;;  %v639_v41 = vunpack.c.h.bf16 %v2003_v42 }
  0x7c   : > { %2833 = vst [vmem:[#allocation21_spill] sm:$0xff] %v2006_v60  ;;  %v436_v4 = vadd.f32 %v435_v59, %v420_v7  ;;  %v515_v29 = vadd.f32 %v514_v9, %v493_v32  ;;  %v582_v7 = vunpack.c.h.bf16 %v2006_v60  ;;  %v2025_v59 = vld [vmem:[%s1798_s15 + $0x2c0] sm:$0xff]  ;;  %v594_v9 = vadd.f32 %v593_v2, %v566_v51  ;;  %v2029_v6 = vld [vmem:[%s1798_s15 + $0x2d0] sm:$0xff] }
  0x7d   : > { %2834 = vst [vmem:[#allocation22_spill] sm:$0xff] %v2025_v59  ;;  %2835 = vst [vmem:[#allocation23_spill] sm:$0xff] %v2029_v6  ;;  %v2040_v32 = vld [vmem:[%s1798_s15 + $0x300] sm:$0xff]  ;;  %v2043_v51 = vld [vmem:[%s1798_s15 + $0x310] sm:$0xff]  ;;  %v651_v63 = vunpack.c.h.bf16 %v2025_v59  ;;  %v655_v60 = vunpack.c.h.bf16 %v2029_v6  ;;  %v728_v59 = vunpack.c.h.bf16 %v2057_v30 }
  0x7e   : > { %v516_v0 = vadd.f32 %v515_v29, %v497_v36  ;;  %v452_v57 = vadd.f32 %v436_v4, %v371_v35  ;;  %2837 = vst [vmem:[#allocation25_spill] sm:$0xff] %v2040_v32  ;;  %2838 = vst [vmem:[#allocation26_spill] sm:$0xff] %v2043_v51  ;;  %v595_v36 = vadd.f32 %v594_v9, %v570_v61  ;;  %v2046_v29 = vld [vmem:[%s1798_s15 + $0x2f0] sm:$0xff]  ;;  %v716_v2 = vunpack.c.h.bf16 %v2040_v32  ;;  %v2112_v30 = vld [vmem:[%s1798_s15 + $0x3e0] sm:$0xff] }
  0x7f   : > { %2839 = vst [vmem:[#allocation27_spill] sm:$0xff] %v2046_v29  ;;  %v673_v35 = vadd.f32 %v639_v41, %v635_v48  ;;  %v720_v56 = vunpack.c.h.bf16 %v2043_v51  ;;  %v659_v41 = vunpack.c.h.bf16 %v2032_v50  ;;  %v663_v48 = vunpack.c.h.bf16 %v2046_v29  ;;  %v2097_v51 = vld [vmem:[%s1798_s15 + $0x3b0] sm:$0xff]  ;;  %2852 = vst [vmem:[#allocation40_spill] sm:$0xff] %v2112_v30 }
  0x80   : > { %v517_v4 = vadd.f32 %v516_v0, %v501_v15  ;;  %v596_v61 = vadd.f32 %v595_v36, %v574_v33  ;;  %v2065_v0 = vld [vmem:[%s1798_s15 + $0x340] sm:$0xff]  ;;  %v724_v50 = vunpack.c.h.bf16 %v2054_v8  ;;  %2849 = vst [vmem:[#allocation37_spill] sm:$0xff] %v2097_v51  ;;  %v809_v32 = vunpack.c.h.bf16 %v2097_v51  ;;  %v2152_v51 = vld [vmem:[%s1798_s15 + $0x68] sm:$0xff] }
  0x81   : > { %v674_v9 = vadd.f32 %v673_v35, %v643_v55  ;;  %2842 = vst [vmem:[#allocation30_spill] sm:$0xff] %v2065_v0  ;;  %v2069_v35 = vld [vmem:[%s1798_s15 + $0x350] sm:$0xff]  ;;  %v2080_v33 = vld [vmem:[%s1798_s15 + $0x380] sm:$0xff]  ;;  %v732_v10 = vunpack.c.h.bf16 %v2065_v0  ;;  %2860 = vst [vmem:[#allocation48_spill] sm:$0xff] %v2152_v51 }
  0x82   : > { %v597_v55 = vadd.f32 %v596_v61, %v578_v58  ;;  %2843 = vst [vmem:[#allocation31_spill] sm:$0xff] %v2069_v35  ;;  %v533_v6 = vadd.f32 %v517_v4, %v452_v57  ;;  %2845 = vst [vmem:[#allocation33_spill] sm:$0xff] %v2080_v33  ;;  %v2086_v61 = vld [vmem:[%s1798_s15 + $0x370] sm:$0xff]  ;;  %v754_v57 = vadd.f32 %v720_v56, %v716_v2  ;;  %v736_v29 = vunpack.c.h.bf16 %v2069_v35  ;;  %v2094_v8 = vld [vmem:[%s1798_s15 + $0x3a0] sm:$0xff] }
  0x83   : > { %v675_v36 = vadd.f32 %v674_v9, %v647_v26  ;;  %v2083_v26 = vld [vmem:[%s1798_s15 + $0x390] sm:$0xff]  ;;  %2847 = vst [vmem:[#allocation35_spill] sm:$0xff] %v2086_v61  ;;  %2848 = vst [vmem:[#allocation36_spill] sm:$0xff] %v2094_v8  ;;  %v797_v9 = vunpack.c.h.bf16 %v2080_v33  ;;  %v740_v56 = vunpack.c.h.bf16 %v2072_v40  ;;  %v744_v2 = vunpack.c.h.bf16 %v2086_v61 }
  0x84   : > { %2846 = vst [vmem:[#allocation34_spill] sm:$0xff] %v2083_v26  ;;  %v598_v4 = vadd.f32 %v597_v55, %v582_v7  ;;  %v801_v0 = vunpack.c.h.bf16 %v2083_v26  ;;  %v2105_v55 = vld [vmem:[%s1798_s15 + $0x3c0] sm:$0xff]  ;;  %v805_v40 = vunpack.c.h.bf16 %v2094_v8  ;;  %v2134_v8 = vld [vmem:[%s1798_s15 + $0x28] sm:$0xff]  ;;  %v2137_v26 = vld [vmem:[%s1798_s15 + $0x38] sm:$0xff] }
  0x85   : > { %v676_v58 = vadd.f32 %v675_v36, %v651_v63  ;;  %v755_v36 = vadd.f32 %v754_v57, %v724_v50  ;;  %2850 = vst [vmem:[#allocation38_spill] sm:$0xff] %v2105_v55  ;;  %v2109_v57 = vld [vmem:[%s1798_s15 + $0x3d0] sm:$0xff]  ;;  %v813_v15 = vunpack.c.h.bf16 %v2105_v55  ;;  %2856 = vst [vmem:[#allocation44_spill] sm:$0xff] %v2134_v8  ;;  %v244_v33 = vunpack.c.h.bf16 %v2137_v26 }
  0x86   : > { %2851 = vst [vmem:[#allocation39_spill] sm:$0xff] %v2109_v57  ;;  %v614_v35 = vadd.f32 %v598_v4, %v533_v6  ;;  %v835_v6 = vadd.f32 %v801_v0, %v797_v9  ;;  %v817_v61 = vunpack.c.h.bf16 %v2109_v57  ;;  %2857 = vst [vmem:[#allocation45_spill] sm:$0xff] %v2137_v26  ;;  %v2174_v26 = vld [vmem:[%s1798_s15 + $0xa8] sm:$0xff] }
  0x87   : > { %v677_v63 = vadd.f32 %v676_v58, %v655_v60  ;;  %v756_v58 = vadd.f32 %v755_v36, %v728_v59  ;;  %v2120_v60 = vld [vmem:[%s1798_s15 + $0x8] sm:$0xff]  ;;  %v2123_v59 = vld [vmem:[%s1798_s15 + $0x18] sm:$0xff]  ;;  %2864 = vst [vmem:[#allocation52_spill] sm:$0xff] %v2174_v26 }
  0x88   : > { %2853 = vst [vmem:[#allocation41_spill] sm:$0xff] %v2120_v60  ;;  %2854 = vst [vmem:[#allocation42_spill] sm:$0xff] %v2123_v59  ;;  %v232_v36 = vunpack.c.h.bf16 %v2120_v60  ;;  %v236_v55 = vunpack.c.h.bf16 %v2123_v59  ;;  %v2185_v0 = vld [vmem:[%s1798_s15 + $0xc8] sm:$0xff] }
  0x89   : > { %v678_v50 = vadd.f32 %v677_v63, %v659_v41  ;;  %v757_v41 = vadd.f32 %v756_v58, %v732_v10  ;;  %v2126_v63 = vld [vmem:[%s1798_s15 + $0x3f0] sm:$0xff]  ;;  %v836_v58 = vadd.f32 %v835_v6, %v805_v40  ;;  %v2149_v6 = vld [vmem:[%s1798_s15 + $0x58] sm:$0xff]  ;;  %2866 = vst [vmem:[#allocation54_spill] sm:$0xff] %v2185_v0 }
  0x8a   : > { %2855 = vst [vmem:[#allocation43_spill] sm:$0xff] %v2126_v63  ;;  %v825_v9 = vunpack.c.h.bf16 %v2126_v63  ;;  %2859 = vst [vmem:[#allocation47_spill] sm:$0xff] %v2149_v6  ;;  %v282_v59 = vadd.f32 %v236_v55, %v232_v36  ;;  %v252_v63 = vunpack.c.h.bf16 %v2149_v6  ;;  %v256_v36 = vunpack.c.h.bf16 %v2152_v51  ;;  %v2189_v6 = vld [vmem:[%s1798_s15 + $0xd8] sm:$0xff] }
  0x8b   : > { %v679_v4 = vadd.f32 %v678_v50, %v663_v48  ;;  %v758_v10 = vadd.f32 %v757_v41, %v736_v29  ;;  %v821_v48 = vunpack.c.h.bf16 %v2112_v30  ;;  %v2145_v50 = vld [vmem:[%s1798_s15 + $0x48] sm:$0xff]  ;;  %v837_v41 = vadd.f32 %v836_v58, %v809_v32  ;;  %v2163_v32 = vld [vmem:[%s1798_s15 + $0x98] sm:$0xff]  ;;  %2867 = vst [vmem:[#allocation55_spill] sm:$0xff] %v2189_v6 }
  0x8c   : > { %2858 = vst [vmem:[#allocation46_spill] sm:$0xff] %v2145_v50  ;;  %v240_v30 = vunpack.c.h.bf16 %v2134_v8  ;;  %v2160_v29 = vld [vmem:[%s1798_s15 + $0x88] sm:$0xff]  ;;  %2862 = vst [vmem:[#allocation50_spill] sm:$0xff] %v2163_v32  ;;  %v2166_v58 = vld [vmem:[%s1798_s15 + $0x78] sm:$0xff]  ;;  %v317_v55 = vunpack.c.h.bf16 %v2163_v32  ;;  %v333_v51 = vunpack.c.h.bf16 %v2189_v6 }
  0x8d   : > { %v759_v40 = vadd.f32 %v758_v10, %v740_v56  ;;  %v695_v57 = vadd.f32 %v679_v4, %v614_v35  ;;  %2861 = vst [vmem:[#allocation49_spill] sm:$0xff] %v2160_v29  ;;  %v838_v10 = vadd.f32 %v837_v41, %v813_v15  ;;  %2863 = vst [vmem:[#allocation51_spill] sm:$0xff] %v2166_v58  ;;  %v248_v35 = vunpack.c.h.bf16 %v2145_v50  ;;  %v2193_v8 = vld [vmem:[%s1798_s15 + $0x108] sm:$0xff] }
  0x8e   : > { %v283_v15 = vadd.f32 %v282_v59, %v240_v30  ;;  %v313_v41 = vunpack.c.h.bf16 %v2160_v29  ;;  %v321_v50 = vunpack.c.h.bf16 %v2174_v26  ;;  %2868 = vst [vmem:[#allocation56_spill] sm:$0xff] %v2193_v8  ;;  %v329_v4 = vunpack.c.h.bf16 %v2185_v0  ;;  %v2217_v26 = vld [vmem:[%s1798_s15 + $0x138] sm:$0xff]  ;;  %v2225_v0 = vld [vmem:[%s1798_s15 + $0x148] sm:$0xff] }
  0x8f   : > { %v760_v56 = vadd.f32 %v759_v40, %v744_v2  ;;  %v839_v2 = vadd.f32 %v838_v10, %v817_v61  ;;  %v2177_v40 = vld [vmem:[%s1798_s15 + $0xb8] sm:$0xff]  ;;  %2873 = vst [vmem:[#allocation61_spill] sm:$0xff] %v2217_v26  ;;  %2874 = vst [vmem:[#allocation62_spill] sm:$0xff] %v2225_v0  ;;  %v2239_v32 = vld [vmem:[%s1798_s15 + $0x188] sm:$0xff] }
  0x90   : > { %2865 = vst [vmem:[#allocation53_spill] sm:$0xff] %v2177_v40  ;;  %v284_v10 = vadd.f32 %v283_v15, %v244_v33  ;;  %v325_v60 = vunpack.c.h.bf16 %v2177_v40  ;;  %v2200_v61 = vld [vmem:[%s1798_s15 + $0x118] sm:$0xff]  ;;  %v363_v15 = vadd.f32 %v317_v55, %v313_v41  ;;  %v2213_v40 = vld [vmem:[%s1798_s15 + $0x128] sm:$0xff]  ;;  %2877 = vst [vmem:[#allocation65_spill] sm:$0xff] %v2239_v32 }
  0x91   : > { %v776_v30 = vadd.f32 %v760_v56, %v695_v57  ;;  %v840_v59 = vadd.f32 %v839_v2, %v821_v48  ;;  %2869 = vst [vmem:[#allocation57_spill] sm:$0xff] %v2200_v61  ;;  %v2203_v48 = vld [vmem:[%s1798_s15 + $0xe8] sm:$0xff]  ;;  %v2206_v56 = vld [vmem:[%s1798_s15 + $0xf8] sm:$0xff]  ;;  %2872 = vst [vmem:[#allocation60_spill] sm:$0xff] %v2213_v40  ;;  %v398_v2 = vunpack.c.h.bf16 %v2200_v61 }
  0x92   : > { %v285_v33 = vadd.f32 %v284_v10, %v248_v35  ;;  %2870 = vst [vmem:[#allocation58_spill] sm:$0xff] %v2203_v48  ;;  %2871 = vst [vmem:[#allocation59_spill] sm:$0xff] %v2206_v56  ;;  %v364_v10 = vadd.f32 %v363_v15, %v321_v50  ;;  %v337_v55 = vunpack.c.h.bf16 %v2203_v48  ;;  %v341_v6 = vunpack.c.h.bf16 %v2206_v56  ;;  %v2228_v50 = vld [vmem:[%s1798_s15 + $0x158] sm:$0xff] }
  0x93   : > { %v841_v57 = vadd.f32 %v840_v59, %v825_v9  ;;  %v394_v9 = vunpack.c.h.bf16 %v2193_v8  ;;  %2875 = vst [vmem:[#allocation63_spill] sm:$0xff] %v2228_v50  ;;  %v402_v15 = vunpack.c.h.bf16 %v2213_v40  ;;  %v410_v48 = vunpack.c.h.bf16 %v2225_v0  ;;  %v2257_v61 = vld [vmem:[%s1798_s15 + $0x1b8] sm:$0xff] }
  0x94   : > { %v286_v59 = vadd.f32 %v285_v33, %v252_v63  ;;  %v365_v63 = vadd.f32 %v364_v10, %v325_v60  ;;  %v2242_v60 = vld [vmem:[%s1798_s15 + $0x198] sm:$0xff]  ;;  %v406_v33 = vunpack.c.h.bf16 %v2217_v26  ;;  %v414_v56 = vunpack.c.h.bf16 %v2228_v50  ;;  %2881 = vst [vmem:[#allocation69_spill] sm:$0xff] %v2257_v61  ;;  %v2273_v26 = vld [vmem:[%s1798_s15 + $0x1e8] sm:$0xff] }
  0x95   : > { %v857_v35 = vadd.f32 %v841_v57, %v776_v30  ;;  %v2231_v57 = vld [vmem:[%s1798_s15 + $0x168] sm:$0xff]  ;;  %2878 = vst [vmem:[#allocation66_spill] sm:$0xff] %v2242_v60  ;;  %v2245_v10 = vld [vmem:[%s1798_s15 + $0x178] sm:$0xff]  ;;  %2885 = vst [vmem:[#allocation72_spill] sm:$0xff] %v2273_v26 }
  0x96   : > { %2876 = vst [vmem:[#allocation64_spill] sm:$0xff] %v2231_v57  ;;  %v287_v41 = vadd.f32 %v286_v59, %v256_v36  ;;  %2879 = vst [vmem:[#allocation67_spill] sm:$0xff] %v2245_v10  ;;  %v444_v59 = vadd.f32 %v398_v2, %v394_v9  ;;  %v475_v36 = vunpack.c.h.bf16 %v2239_v32  ;;  %v479_v2 = vunpack.c.h.bf16 %v2242_v60  ;;  %v2299_v8 = vld [vmem:[%s1798_s15 + $0x238] sm:$0xff] }
  0x97   : > { %v895_v30 = vpack.c.bf16 %v857_v35, %v857_v35  ;;  %v366_v35 = vadd.f32 %v365_v63, %v329_v4  ;;  %v2882_v9 = vunpack.c.h.bf16 %v2166_v58  ;;  %v418_v50 = vunpack.c.h.bf16 %v2231_v57  ;;  %2890 = vst [vmem:[#allocation77_spill] sm:$0xff] %v2299_v8 }
  0x98   : > { %v445_v63 = vadd.f32 %v444_v59, %v402_v15  ;;  %v422_v40 = vunpack.c.h.bf16 %v2245_v10  ;;  %v2270_v59 = vld [vmem:[%s1798_s15 + $0x1d8] sm:$0xff]  ;;  %v487_v10 = vunpack.c.h.bf16 %v2257_v61  ;;  %v2314_v61 = vld [vmem:[%s1798_s15 + $0x268] sm:$0xff]  ;;  %v568_v29 = vunpack.c.h.bf16 %v2299_v8 }
  0x99   : > { %1024 = vmatprep.mubr.bf16.mxu0 %v895_v30  ;;  %v2254_v30 = vld [vmem:[%s1798_s15 + $0x1a8] sm:$0xff]  ;;  %v367_v4 = vadd.f32 %v366_v35, %v333_v51  ;;  %v288_v7 = vadd.f32 %v287_v41, %v2882_v9  ;;  %2884 = vst [vmem:[#allocation71_spill] sm:$0xff] %v2270_v59  ;;  %v525_v9 = vadd.f32 %v479_v2, %v475_v36  ;;  %v495_v57 = vunpack.c.h.bf16 %v2270_v59 }
  0x9a   : > { %2880 = vst [vmem:[#allocation68_spill] sm:$0xff] %v2254_v30  ;;  %v2267_v51 = vld [vmem:[%s1798_s15 + $0x1c8] sm:$0xff]  ;;  %v446_v35 = vadd.f32 %v445_v63, %v406_v33  ;;  %v483_v41 = vunpack.c.h.bf16 %v2254_v30  ;;  %v2285_v33 = vld [vmem:[%s1798_s15 + $0x218] sm:$0xff]  ;;  %2893 = vst [vmem:[#allocation80_spill] sm:$0xff] %v2314_v61 }
  0x9b   : > { %2883 = vst [vmem:[#allocation70_spill] sm:$0xff] %v2267_v51  ;;  %v368_v15 = vadd.f32 %v367_v4, %v337_v55  ;;  %v2282_v55 = vld [vmem:[%s1798_s15 + $0x208] sm:$0xff]  ;;  %2887 = vst [vmem:[#allocation74_spill] sm:$0xff] %v2285_v33  ;;  %v2288_v63 = vld [vmem:[%s1798_s15 + $0x1f8] sm:$0xff]  ;;  %v491_v32 = vunpack.c.h.bf16 %v2267_v51  ;;  %v560_v51 = vunpack.c.h.bf16 %v2285_v33 }
  0x9c   : > { %2886 = vst [vmem:[#allocation73_spill] sm:$0xff] %v2282_v55  ;;  %v447_v4 = vadd.f32 %v446_v35, %v410_v48  ;;  %2888 = vst [vmem:[#allocation75_spill] sm:$0xff] %v2288_v63  ;;  %v2296_v30 = vld [vmem:[%s1798_s15 + $0x228] sm:$0xff]  ;;  %v526_v35 = vadd.f32 %v525_v9, %v483_v41  ;;  %v556_v58 = vunpack.c.h.bf16 %v2282_v55  ;;  %v503_v2 = vunpack.c.h.bf16 %v2288_v63  ;;  %v2339_v33 = vld [vmem:[%s1798_s15 + $0x2b8] sm:$0xff] }
  0x9d   : > { %v369_v60 = vadd.f32 %v368_v15, %v341_v6  ;;  %2889 = vst [vmem:[#allocation76_spill] sm:$0xff] %v2296_v30  ;;  %v499_v6 = vunpack.c.h.bf16 %v2273_v26  ;;  %v2307_v15 = vld [vmem:[%s1798_s15 + $0x248] sm:$0xff]  ;;  %v564_v26 = vunpack.c.h.bf16 %v2296_v30  ;;  %2898 = vst [vmem:[#allocation85_spill] sm:$0xff] %v2339_v33  ;;  %v649_v55 = vunpack.c.h.bf16 %v2339_v33 }
  0x9e   : > { %v448_v48 = vadd.f32 %v447_v4, %v414_v56  ;;  %2891 = vst [vmem:[#allocation78_spill] sm:$0xff] %v2307_v15  ;;  %v527_v9 = vadd.f32 %v526_v35, %v487_v10  ;;  %v2311_v4 = vld [vmem:[%s1798_s15 + $0x258] sm:$0xff]  ;;  %v2322_v56 = vld [vmem:[%s1798_s15 + $0x288] sm:$0xff]  ;;  %v572_v0 = vunpack.c.h.bf16 %v2307_v15 }
  0x9f   : > { %2892 = vst [vmem:[#allocation79_spill] sm:$0xff] %v2311_v4  ;;  %v373_v59 = vadd.f32 %v369_v60, %v288_v7  ;;  %2894 = vst [vmem:[#allocation81_spill] sm:$0xff] %v2322_v56  ;;  %v606_v7 = vadd.f32 %v560_v51, %v556_v58  ;;  %v576_v63 = vunpack.c.h.bf16 %v2311_v4  ;;  %v2336_v30 = vld [vmem:[%s1798_s15 + $0x2a8] sm:$0xff]  ;;  %v637_v35 = vunpack.c.h.bf16 %v2322_v56 }
  0xa0   : > { %v449_v41 = vadd.f32 %v448_v48, %v418_v50  ;;  %v2325_v50 = vld [vmem:[%s1798_s15 + $0x298] sm:$0xff]  ;;  %v528_v10 = vadd.f32 %v527_v9, %v491_v32  ;;  %2897 = vst [vmem:[#allocation84_spill] sm:$0xff] %v2336_v30  ;;  %v580_v58 = vunpack.c.h.bf16 %v2314_v61  ;;  %v2354_v8 = vld [vmem:[%s1798_s15 + $0x2e8] sm:$0xff]  ;;  %v645_v61 = vunpack.c.h.bf16 %v2336_v30 }
  0xa1   : > { %2895 = vst [vmem:[#allocation82_spill] sm:$0xff] %v2325_v50  ;;  %v2328_v48 = vld [vmem:[%s1798_s15 + $0x278] sm:$0xff]  ;;  %v607_v9 = vadd.f32 %v606_v7, %v564_v26  ;;  %v641_v15 = vunpack.c.h.bf16 %v2325_v50  ;;  %2901 = vst [vmem:[#allocation88_spill] sm:$0xff] %v2354_v8  ;;  %v2376_v30 = vld [vmem:[%s1798_s15 + $0x328] sm:$0xff] }
  0xa2   : > { %2896 = vst [vmem:[#allocation83_spill] sm:$0xff] %v2328_v48  ;;  %v450_v60 = vadd.f32 %v449_v41, %v422_v40  ;;  %v529_v32 = vadd.f32 %v528_v10, %v495_v57  ;;  %v584_v51 = vunpack.c.h.bf16 %v2328_v48  ;;  %v2347_v41 = vld [vmem:[%s1798_s15 + $0x2c8] sm:$0xff]  ;;  %v2351_v7 = vld [vmem:[%s1798_s15 + $0x2d8] sm:$0xff]  ;;  %2905 = vst [vmem:[#allocation92_spill] sm:$0xff] %v2376_v30 }
  0xa3   : > { %2899 = vst [vmem:[#allocation86_spill] sm:$0xff] %v2347_v41  ;;  %v608_v10 = vadd.f32 %v607_v9, %v568_v29  ;;  %2900 = vst [vmem:[#allocation87_spill] sm:$0xff] %v2351_v7  ;;  %v2365_v29 = vld [vmem:[%s1798_s15 + $0x318] sm:$0xff]  ;;  %v653_v57 = vunpack.c.h.bf16 %v2347_v41  ;;  %v657_v48 = vunpack.c.h.bf16 %v2351_v7  ;;  %v2382_v36 = vld [vmem:[%s1798_s15 + $0x348] sm:$0xff] }
  0xa4   : > { %v530_v26 = vadd.f32 %v529_v32, %v499_v6  ;;  %v454_v4 = vadd.f32 %v450_v60, %v373_v59  ;;  %v2362_v6 = vld [vmem:[%s1798_s15 + $0x308] sm:$0xff]  ;;  %2903 = vst [vmem:[#allocation90_spill] sm:$0xff] %v2365_v29  ;;  %v2368_v9 = vld [vmem:[%s1798_s15 + $0x2f8] sm:$0xff]  ;;  %v687_v59 = vadd.f32 %v641_v15, %v637_v35  ;;  %2907 = vst [vmem:[#allocation94_spill] sm:$0xff] %v2382_v36  ;;  %v661_v35 = vunpack.c.h.bf16 %v2354_v8 }
  0xa5   : > { %2902 = vst [vmem:[#allocation89_spill] sm:$0xff] %v2362_v6  ;;  %v609_v32 = vadd.f32 %v608_v10, %v572_v0  ;;  %2904 = vst [vmem:[#allocation91_spill] sm:$0xff] %v2368_v9  ;;  %v2379_v50 = vld [vmem:[%s1798_s15 + $0x338] sm:$0xff]  ;;  %v718_v15 = vunpack.c.h.bf16 %v2362_v6  ;;  %v726_v8 = vunpack.c.h.bf16 %v2376_v30  ;;  %v2422_v6 = vld [vmem:[%s1798_s15 + $0x3c8] sm:$0xff] }
  0xa6   : > { %v531_v60 = vadd.f32 %v530_v26, %v503_v2  ;;  %v688_v10 = vadd.f32 %v687_v59, %v645_v61  ;;  %2906 = vst [vmem:[#allocation93_spill] sm:$0xff] %v2379_v50  ;;  %v722_v2 = vunpack.c.h.bf16 %v2365_v29  ;;  %v665_v26 = vunpack.c.h.bf16 %v2368_v9  ;;  %v2394_v59 = vld [vmem:[%s1798_s15 + $0x368] sm:$0xff]  ;;  %v2397_v7 = vld [vmem:[%s1798_s15 + $0x378] sm:$0xff] }
  0xa7   : > { %v610_v0 = vadd.f32 %v609_v32, %v576_v63  ;;  %v2391_v32 = vld [vmem:[%s1798_s15 + $0x358] sm:$0xff]  ;;  %2909 = vst [vmem:[#allocation96_spill] sm:$0xff] %v2394_v59  ;;  %2910 = vst [vmem:[#allocation97_spill] sm:$0xff] %v2397_v7  ;;  %v730_v40 = vunpack.c.h.bf16 %v2379_v50  ;;  %v734_v9 = vunpack.c.h.bf16 %v2382_v36  ;;  %v746_v50 = vunpack.c.h.bf16 %v2397_v7 }
  0xa8   : > { %v689_v61 = vadd.f32 %v688_v10, %v649_v55  ;;  %2908 = vst [vmem:[#allocation95_spill] sm:$0xff] %v2391_v32  ;;  %v535_v56 = vadd.f32 %v531_v60, %v454_v4  ;;  %v768_v30 = vadd.f32 %v722_v2, %v718_v15  ;;  %v2412_v4 = vld [vmem:[%s1798_s15 + $0x3a8] sm:$0xff]  ;;  %v738_v33 = vunpack.c.h.bf16 %v2391_v32  ;;  %v2419_v29 = vld [vmem:[%s1798_s15 + $0x3b8] sm:$0xff] }
  0xa9   : > { %v611_v63 = vadd.f32 %v610_v0, %v580_v58  ;;  %v2405_v58 = vld [vmem:[%s1798_s15 + $0x388] sm:$0xff]  ;;  %v2408_v0 = vld [vmem:[%s1798_s15 + $0x398] sm:$0xff]  ;;  %2912 = vst [vmem:[#allocation99_spill] sm:$0xff] %v2412_v4  ;;  %v742_v55 = vunpack.c.h.bf16 %v2394_v59  ;;  %v2916_v7 = vunpack.c.l.bf16 %v1809_v11  ;;  %v2924_v11 = vunpack.c.l.bf16 %v1960_v44 }
  0xaa   : > { %2911 = vst [vmem:[#allocation98_spill] sm:$0xff] %v2405_v58  ;;  %v690_v41 = vadd.f32 %v689_v61, %v653_v57  ;;  %v2425_v57 = vld [vmem:[%s1798_s15 + $0x3d8] sm:$0xff]  ;;  %v799_v2 = vunpack.c.h.bf16 %v2405_v58  ;;  %v803_v61 = vunpack.c.h.bf16 %v2408_v0  ;;  %v2930_v44 = vunpack.c.l.bf16 %v1974_v52 }
  0xab   : > { %v612_v10 = vadd.f32 %v611_v63, %v584_v51  ;;  %v769_v51 = vadd.f32 %v768_v30, %v726_v8  ;;  %2913 = vst [vmem:[#allocation100_spill] sm:$0xff] %v2425_v57  ;;  %v2428_v63 = vld [vmem:[%s1798_s15 + $0x3e8] sm:$0xff]  ;;  %v2431_v15 = vld [vmem:[%s1798_s15 + $0x3f8] sm:$0xff]  ;;  %v807_v8 = vunpack.c.h.bf16 %v2412_v4  ;;  %v811_v30 = vunpack.c.h.bf16 %v2419_v29 }
  0xac   : > { %v691_v21 = vadd.f32 %v690_v41, %v657_v48  ;;  %2914 = vst [vmem:[#allocation101_spill] sm:$0xff] %v2428_v63  ;;  %2915 = vst [vmem:[#allocation102_spill] sm:$0xff] %v2431_v15  ;;  %v815_v41 = vunpack.c.h.bf16 %v2422_v6  ;;  %v819_v49 = vunpack.c.h.bf16 %v2425_v57  ;;  %v823_v3 = vunpack.c.h.bf16 %v2428_v63 }
  0xad   : > { %v616_v60 = vadd.f32 %v612_v10, %v535_v56  ;;  %v770_v48 = vadd.f32 %v769_v51, %v730_v40  ;;  %v827_v56 = vunpack.c.h.bf16 %v2431_v15  ;;  %v849_v58 = vadd.f32 %v803_v61, %v799_v2 }
  0xae   : > { %v692_v59 = vadd.f32 %v691_v21, %v661_v35  ;;  %v2917_v21 = vunpack.c.l.bf16 %v1812_v12  ;;  %v2918_v35 = vunpack.c.l.bf16 %v1826_v19  ;;  %v2919_v51 = vunpack.c.l.bf16 %v1837_v24 }
  0xaf   : > { %v771_v32 = vadd.f32 %v770_v48, %v734_v9  ;;  %v2920_v4 = vunpack.c.l.bf16 %v1873_v53  ;;  %v2921_v57 = vunpack.c.l.bf16 %v1876_v54  ;;  %v2922_v15 = vunpack.c.l.bf16 %v1918_v47 }
  0xb0   : > { %v693_v10 = vadd.f32 %v692_v59, %v665_v26  ;;  %v261_v40 = vadd.f32 %v2917_v21, %v2916_v7  ;;  %v342_v36 = vadd.f32 %v2919_v51, %v2918_v35  ;;  %v2923_v9 = vunpack.c.l.bf16 %v1921_v37 }
  0xb1   : > { %v423_v63 = vadd.f32 %v2921_v57, %v2920_v4  ;;  %v2925_v12 = vunpack.c.l.bf16 %v1963_v62  ;;  %v772_v19 = vadd.f32 %v771_v32, %v738_v33  ;;  %v850_v2 = vadd.f32 %v849_v58, %v807_v8 }
  0xb2   : > { %v504_v26 = vadd.f32 %v2923_v9, %v2922_v15  ;;  %v697_v59 = vadd.f32 %v693_v10, %v616_v60  ;;  %v2926_v24 = vunpack.c.l.bf16 %v1815_v13  ;;  %v2927_v53 = vunpack.c.l.bf16 %v1847_v31 }
  0xb3   : > { %v585_v7 = vadd.f32 %v2925_v12, %v2924_v11  ;;  %v2928_v4 = vunpack.c.l.bf16 %v1891_v1  ;;  %v2929_v37 = vunpack.c.l.bf16 %v1932_v38  ;;  %v773_v62 = vadd.f32 %v772_v19, %v742_v55  ;;  %v2948_v19 = vld [vmem:[#allocation16_spill] sm:$0xff] }
  0xb4   : > { %v262_v61 = vadd.f32 %v261_v40, %v2926_v24  ;;  %v343_v54 = vadd.f32 %v342_v36, %v2927_v53  ;;  %v851_v48 = vadd.f32 %v850_v2, %v811_v30  ;;  %v2931_v33 = vunpack.c.l.bf16 %v1818_v14  ;;  %v2950_v24 = vld [vmem:[#allocation19_spill] sm:$0xff] }
  0xb5   : > { %v424_v47 = vadd.f32 %v423_v63, %v2928_v4  ;;  %v505_v57 = vadd.f32 %v504_v26, %v2929_v37  ;;  %v586_v15 = vadd.f32 %v585_v7, %v2930_v44  ;;  %v2932_v13 = vunpack.c.l.bf16 %v2000_v43 }
  0xb6   : > { %v263_v32 = vadd.f32 %v262_v61, %v2931_v33  ;;  %v2933_v58 = vunpack.c.l.bf16 %v2003_v42  ;;  %v2934_v36 = vunpack.c.l.bf16 %v1856_v39  ;;  %v2935_v60 = vunpack.c.l.bf16 %v1894_v5 }
  0xb7   : > { %v2936_v63 = vunpack.c.l.bf16 %v1935_v23  ;;  %v2937_v55 = vunpack.c.l.bf16 %v1977_v28  ;;  %v774_v30 = vadd.f32 %v773_v62, %v746_v50  ;;  %v852_v14 = vadd.f32 %v851_v48, %v815_v41  ;;  %v2962_v48 = vld [vmem:[#allocation14_spill] sm:$0xff] }
  0xb8   : > { %v666_v31 = vadd.f32 %v2933_v58, %v2932_v13  ;;  %v344_v1 = vadd.f32 %v343_v54, %v2934_v36  ;;  %v425_v38 = vadd.f32 %v424_v47, %v2935_v60  ;;  %v2938_v10 = vunpack.c.l.bf16 %v1823_v18  ;;  %v2954_v54 = vld [vmem:[#allocation22_spill] sm:$0xff]  ;;  %v2956_v47 = vld [vmem:[#allocation25_spill] sm:$0xff] }
  0xb9   : > { %v506_v52 = vadd.f32 %v505_v57, %v2936_v63  ;;  %v587_v8 = vadd.f32 %v586_v15, %v2937_v55  ;;  %v2939_v42 = vunpack.c.l.bf16 %v2014_v27  ;;  %v2940_v39 = vunpack.c.l.bf16 %v1862_v45  ;;  %v2964_v13 = vld [vmem:[#allocation17_spill] sm:$0xff]  ;;  %v2970_v55 = vld [vmem:[#allocation23_spill] sm:$0xff] }
  0xba   : > { %v264_v43 = vadd.f32 %v263_v32, %v2938_v10  ;;  %v2941_v5 = vunpack.c.l.bf16 %v1903_v16  ;;  %v2942_v23 = vunpack.c.l.bf16 %v1943_v17  ;;  %v2943_v28 = vunpack.c.l.bf16 %v1985_v34 }
  0xbb   : > { %v667_v21 = vadd.f32 %v666_v31, %v2939_v42  ;;  %v345_v40 = vadd.f32 %v344_v1, %v2940_v39  ;;  %v778_v50 = vadd.f32 %v774_v30, %v697_v59  ;;  %v853_v41 = vadd.f32 %v852_v14, %v819_v49  ;;  %v2952_v49 = vld [vmem:[#allocation10_spill] sm:$0xff]  ;;  %v2966_v31 = vld [vmem:[#allocation20_spill] sm:$0xff]  ;;  %v2974_v42 = vld [vmem:[#allocation13_spill] sm:$0xff] }
  0xbc   : > { %v426_v35 = vadd.f32 %v425_v38, %v2941_v5  ;;  %v507_v51 = vadd.f32 %v506_v52, %v2942_v23  ;;  %v588_v9 = vadd.f32 %v587_v8, %v2943_v28  ;;  %v2944_v18 = vunpack.c.l.bf16 %v1829_v20  ;;  %v2968_v38 = vld [vmem:[#allocation11_spill] sm:$0xff]  ;;  %v2972_v14 = vld [vmem:[#allocation28_spill] sm:$0xff]  ;;  %v2978_v23 = vld [vmem:[#allocation18_spill] sm:$0xff] }
  0xbd   : > { %v2945_v27 = vunpack.c.l.bf16 %v2017_v22  ;;  %v2946_v45 = vunpack.c.l.bf16 %v1865_v46  ;;  %v2947_v16 = vunpack.c.l.bf16 %v1906_v25  ;;  %v2949_v17 = vunpack.c.l.bf16 %v2948_v19  ;;  %v2958_v46 = vld [vmem:[#allocation26_spill] sm:$0xff]  ;;  %v2960_v25 = vld [vmem:[#allocation12_spill] sm:$0xff] }
  0xbe   : > { %v265_v26 = vadd.f32 %v264_v43, %v2944_v18  ;;  %v2951_v34 = vunpack.c.l.bf16 %v2950_v24  ;;  %v854_v59 = vadd.f32 %v853_v41, %v823_v3  ;;  %v2953_v53 = vunpack.c.l.bf16 %v2952_v49  ;;  %v2992_v49 = vld [vmem:[#allocation42_spill] sm:$0xff] }
  0xbf   : > { %v668_v11 = vadd.f32 %v667_v21, %v2945_v27  ;;  %v346_v12 = vadd.f32 %v345_v40, %v2946_v45  ;;  %v427_v7 = vadd.f32 %v426_v35, %v2947_v16  ;;  %v508_v2 = vadd.f32 %v507_v51, %v2949_v17  ;;  %v2976_v40 = vld [vmem:[#allocation15_spill] sm:$0xff]  ;;  %v2984_v45 = vld [vmem:[#allocation29_spill] sm:$0xff]  ;;  %v2988_v17 = vld [vmem:[#allocation34_spill] sm:$0xff] }
  0xc0   : > { %v589_v61 = vadd.f32 %v588_v9, %v2951_v34  ;;  %v266_v20 = vadd.f32 %v265_v26, %v2953_v53  ;;  %v2955_v4 = vunpack.c.l.bf16 %v2954_v54  ;;  %v2957_v37 = vunpack.c.l.bf16 %v2956_v47  ;;  %v2980_v9 = vld [vmem:[#allocation21_spill] sm:$0xff]  ;;  %v2982_v26 = vld [vmem:[#allocation24_spill] sm:$0xff] }
  0xc1   : > { %v2959_v57 = vunpack.c.l.bf16 %v2958_v46  ;;  %v2961_v15 = vunpack.c.l.bf16 %v2960_v25  ;;  %v2963_v33 = vunpack.c.l.bf16 %v2962_v48  ;;  %v2965_v58 = vunpack.c.l.bf16 %v2964_v13  ;;  %v2994_v54 = vld [vmem:[#allocation49_spill] sm:$0xff] }
  0xc2   : > { %v669_v22 = vadd.f32 %v668_v11, %v2955_v4  ;;  %v2967_v36 = vunpack.c.l.bf16 %v2966_v31  ;;  %v855_v60 = vadd.f32 %v854_v59, %v827_v56  ;;  %v2969_v63 = vunpack.c.l.bf16 %v2968_v38 }
  0xc3   : > { %v747_v44 = vadd.f32 %v2959_v57, %v2957_v37  ;;  %v347_v62 = vadd.f32 %v346_v12, %v2961_v15  ;;  %v428_v32 = vadd.f32 %v427_v7, %v2963_v33  ;;  %v509_v3 = vadd.f32 %v508_v2, %v2965_v58  ;;  %v2986_v7 = vld [vmem:[#allocation33_spill] sm:$0xff]  ;;  %v2998_v37 = vld [vmem:[#allocation56_spill] sm:$0xff] }
  0xc4   : > { %v590_v1 = vadd.f32 %v589_v61, %v2967_v36  ;;  %v267_v52 = vadd.f32 %v266_v20, %v2969_v63  ;;  %v2971_v8 = vunpack.c.l.bf16 %v2970_v55  ;;  %v2973_v10 = vunpack.c.l.bf16 %v2972_v14  ;;  %v2990_v61 = vld [vmem:[#allocation41_spill] sm:$0xff] }
  0xc5   : > { %v2975_v21 = vunpack.c.l.bf16 %v2974_v42  ;;  %v2977_v5 = vunpack.c.l.bf16 %v2976_v40  ;;  %v2979_v51 = vunpack.c.l.bf16 %v2978_v23  ;;  %v2981_v56 = vunpack.c.l.bf16 %v2980_v9  ;;  %v3000_v57 = vld [vmem:[#allocation57_spill] sm:$0xff]  ;;  %v3020_v9 = vld [vmem:[#allocation66_spill] sm:$0xff] }
  0xc6   : > { %v670_v30 = vadd.f32 %v669_v22, %v2971_v8  ;;  %v748_v43 = vadd.f32 %v747_v44, %v2973_v10  ;;  %v859_v18 = vadd.f32 %v855_v60, %v778_v50  ;;  %v2983_v27 = vunpack.c.l.bf16 %v2982_v26  ;;  %v2996_v50 = vld [vmem:[#allocation50_spill] sm:$0xff]  ;;  %v3008_v60 = vld [vmem:[#allocation44_spill] sm:$0xff]  ;;  %v3018_v23 = vld [vmem:[#allocation65_spill] sm:$0xff] }
  0xc7   : > { %v348_v39 = vadd.f32 %v347_v62, %v2975_v21  ;;  %v429_v35 = vadd.f32 %v428_v32, %v2977_v5  ;;  %v510_v28 = vadd.f32 %v509_v3, %v2979_v51  ;;  %v591_v41 = vadd.f32 %v590_v1, %v2981_v56  ;;  %v3002_v62 = vld [vmem:[#allocation27_spill] sm:$0xff]  ;;  %v3004_v32 = vld [vmem:[#allocation30_spill] sm:$0xff]  ;;  %v3006_v3 = vld [vmem:[#allocation36_spill] sm:$0xff] }
  0xc8   : > { %v671_v11 = vadd.f32 %v670_v30, %v2983_v27  ;;  %v2985_v12 = vunpack.c.l.bf16 %v2984_v45  ;;  %v2987_v19 = vunpack.c.l.bf16 %v2986_v7  ;;  %v2989_v2 = vunpack.c.l.bf16 %v2988_v17  ;;  %v3012_v30 = vld [vmem:[#allocation60_spill] sm:$0xff]  ;;  %v3024_v27 = vld [vmem:[#allocation74_spill] sm:$0xff]  ;;  %v3028_v17 = vld [vmem:[#allocation53_spill] sm:$0xff] }
  0xc9   : > { %v370_v34 = vadd.f32 %v348_v39, %v267_v52  ;;  %v2991_v59 = vunpack.c.l.bf16 %v2990_v61  ;;  %v2993_v53 = vunpack.c.l.bf16 %v2992_v49  ;;  %v2995_v4 = vunpack.c.l.bf16 %v2994_v54  ;;  %v3010_v52 = vld [vmem:[#allocation52_spill] sm:$0xff]  ;;  %v3016_v39 = vld [vmem:[#allocation37_spill] sm:$0xff]  ;;  %v3034_v54 = vld [vmem:[#allocation38_spill] sm:$0xff] }
  0xca   : > { %v749_v16 = vadd.f32 %v748_v43, %v2985_v12  ;;  %v828_v24 = vadd.f32 %v2989_v2, %v2987_v19  ;;  %v2997_v22 = vunpack.c.l.bf16 %v2996_v50  ;;  %v2999_v46 = vunpack.c.l.bf16 %v2998_v37  ;;  %v3014_v43 = vld [vmem:[#allocation31_spill] sm:$0xff]  ;;  %v3032_v49 = vld [vmem:[#allocation32_spill] sm:$0xff] }
  0xcb   : > { %v275_v20 = vadd.f32 %v2993_v53, %v2991_v59  ;;  %v3001_v44 = vunpack.c.l.bf16 %v3000_v57  ;;  %v1057_v15 = vpack.c.bf16 %v859_v18, %v859_v18  ;;  %v3003_v48 = vunpack.c.l.bf16 %v3002_v62  ;;  %v3022_v18 = vld [vmem:[#allocation73_spill] sm:$0xff] }
  0xcc   : > { %v356_v47 = vadd.f32 %v2997_v22, %v2995_v4  ;;  %v3005_v13 = vunpack.c.l.bf16 %v3004_v32  ;;  %v3007_v31 = vunpack.c.l.bf16 %v3006_v3  ;;  %v451_v1 = vadd.f32 %v429_v35, %v370_v34  ;;  %v3030_v34 = vld [vmem:[#allocation61_spill] sm:$0xff]  ;;  %v3036_v22 = vld [vmem:[#allocation68_spill] sm:$0xff] }
  0xcd   : > { %v437_v25 = vadd.f32 %v3001_v44, %v2999_v46  ;;  %v672_v33 = vadd.f32 %v671_v11, %v3003_v48  ;;  %v3009_v38 = vunpack.c.l.bf16 %v3008_v60  ;;  %v3011_v55 = vunpack.c.l.bf16 %v3010_v52  ;;  %1090 = vmatprep.mubr.bf16.mxu1 %v1057_v15  ;;  %v3038_v46 = vld [vmem:[#allocation76_spill] sm:$0xff]  ;;  %v3042_v48 = vld [vmem:[#allocation54_spill] sm:$0xff] }
  0xce   : > { %v750_v58 = vadd.f32 %v749_v16, %v3005_v13  ;;  %v829_v36 = vadd.f32 %v828_v24, %v3007_v31  ;;  %v3013_v14 = vunpack.c.l.bf16 %v3012_v30  ;;  %v3015_v42 = vunpack.c.l.bf16 %v3014_v43  ;;  %v3026_v16 = vld [vmem:[#allocation45_spill] sm:$0xff] }
  0xcf   : > { %v276_v63 = vadd.f32 %v275_v20, %v3009_v38  ;;  %v357_v8 = vadd.f32 %v356_v47, %v3011_v55  ;;  %v3017_v40 = vunpack.c.l.bf16 %v3016_v39  ;;  %v3019_v51 = vunpack.c.l.bf16 %v3018_v23  ;;  %v3048_v38 = vld [vmem:[#allocation39_spill] sm:$0xff]  ;;  %v3050_v55 = vld [vmem:[#allocation69_spill] sm:$0xff] }
  0xd0   : > { %v438_v10 = vadd.f32 %v437_v25, %v3013_v14  ;;  %v751_v21 = vadd.f32 %v750_v58, %v3015_v42  ;;  %v3021_v35 = vunpack.c.l.bf16 %v3020_v9  ;;  %v3023_v26 = vunpack.c.l.bf16 %v3022_v18  ;;  %v3040_v25 = vld [vmem:[#allocation46_spill] sm:$0xff]  ;;  %v3052_v14 = vld [vmem:[#allocation77_spill] sm:$0xff]  ;;  %v3054_v42 = vld [vmem:[#allocation47_spill] sm:$0xff] }
  0xd1   : > { %v830_v5 = vadd.f32 %v829_v36, %v3017_v40  ;;  %v3025_v11 = vunpack.c.l.bf16 %v3024_v27  ;;  %v532_v12 = vadd.f32 %v510_v28, %v451_v1  ;;  %v3027_v7 = vunpack.c.l.bf16 %v3026_v16  ;;  %v3044_v58 = vld [vmem:[#allocation62_spill] sm:$0xff]  ;;  %v3046_v36 = vld [vmem:[#allocation35_spill] sm:$0xff] }
  0xd2   : > { %v518_v56 = vadd.f32 %v3021_v35, %v3019_v51  ;;  %v3029_v2 = vunpack.c.l.bf16 %v3028_v17  ;;  %v3031_v61 = vunpack.c.l.bf16 %v3030_v34  ;;  %v3033_v53 = vunpack.c.l.bf16 %v3032_v49  ;;  %v3056_v40 = vld [vmem:[#allocation55_spill] sm:$0xff]  ;;  %v3062_v27 = vld [vmem:[#allocation70_spill] sm:$0xff] }
  0xd3   : > { %v599_v45 = vadd.f32 %v3025_v11, %v3023_v26  ;;  %v277_v19 = vadd.f32 %v276_v63, %v3027_v7  ;;  %v3035_v4 = vunpack.c.l.bf16 %v3034_v54  ;;  %v3037_v47 = vunpack.c.l.bf16 %v3036_v22  ;;  %v3058_v51 = vld [vmem:[#allocation63_spill] sm:$0xff]  ;;  %v3068_v17 = vld [vmem:[#allocation82_spill] sm:$0xff] }
  0xd4   : > { %v358_v24 = vadd.f32 %v357_v8, %v3029_v2  ;;  %v439_v59 = vadd.f32 %v438_v10, %v3031_v61  ;;  %v752_v20 = vadd.f32 %v751_v21, %v3033_v53  ;;  %v3039_v28 = vunpack.c.l.bf16 %v3038_v46  ;;  %v3070_v61 = vld [vmem:[#allocation48_spill] sm:$0xff]  ;;  %v3072_v53 = vld [vmem:[#allocation58_spill] sm:$0xff] }
  0xd5   : > { %v831_v50 = vadd.f32 %v830_v5, %v3035_v4  ;;  %v519_v37 = vadd.f32 %v518_v56, %v3037_v47  ;;  %v613_v44 = vadd.f32 %v591_v41, %v532_v12  ;;  %v3041_v15 = vunpack.c.l.bf16 %v3040_v25  ;;  %v3060_v56 = vld [vmem:[#allocation40_spill] sm:$0xff]  ;;  %v3064_v12 = vld [vmem:[#allocation78_spill] sm:$0xff]  ;;  %v3076_v47 = vld [vmem:[#allocation43_spill] sm:$0xff] }
  0xd6   : > { %v600_v57 = vadd.f32 %v599_v45, %v3039_v28  ;;  %v3043_v32 = vunpack.c.l.bf16 %v3042_v48  ;;  %v3045_v3 = vunpack.c.l.bf16 %v3044_v58  ;;  %v3047_v1 = vunpack.c.l.bf16 %v3046_v36  ;;  %v3074_v4 = vld [vmem:[#allocation64_spill] sm:$0xff]  ;;  %v3078_v28 = vld [vmem:[#allocation71_spill] sm:$0xff] }
  0xd7   : > { %v278_v62 = vadd.f32 %v277_v19, %v3041_v15  ;;  %v3049_v63 = vunpack.c.l.bf16 %v3048_v38  ;;  %v3051_v8 = vunpack.c.l.bf16 %v3050_v55  ;;  %v3053_v41 = vunpack.c.l.bf16 %v3052_v14  ;;  %v3066_v19 = vld [vmem:[#allocation81_spill] sm:$0xff]  ;;  %v3080_v25 = vld [vmem:[#allocation79_spill] sm:$0xff]  ;;  %v3082_v48 = vld [vmem:[#allocation84_spill] sm:$0xff] }
  0xd8   : > { %v359_v13 = vadd.f32 %v358_v24, %v3043_v32  ;;  %v440_v31 = vadd.f32 %v439_v59, %v3045_v3  ;;  %v753_v60 = vadd.f32 %v752_v20, %v3047_v1  ;;  %v694_v43 = vadd.f32 %v672_v33, %v613_v44  ;;  %v3084_v58 = vld [vmem:[#allocation51_spill] sm:$0xff]  ;;  %v3090_v55 = vld [vmem:[#allocation89_spill] sm:$0xff] }
  0xd9   : > { %v832_v52 = vadd.f32 %v831_v50, %v3049_v63  ;;  %v520_v30 = vadd.f32 %v519_v37, %v3051_v8  ;;  %v601_v10 = vadd.f32 %v600_v57, %v3053_v41  ;;  %v3055_v21 = vunpack.c.l.bf16 %v3054_v42  ;;  %v3086_v36 = vld [vmem:[#allocation59_spill] sm:$0xff] }
  0xda   : > { %v3057_v5 = vunpack.c.l.bf16 %v3056_v40  ;;  %v3059_v9 = vunpack.c.l.bf16 %v3058_v51  ;;  %v3061_v18 = vunpack.c.l.bf16 %v3060_v56  ;;  %v3063_v11 = vunpack.c.l.bf16 %v3062_v27  ;;  %v3088_v38 = vld [vmem:[#allocation67_spill] sm:$0xff] }
  0xdb   : > { %v279_v39 = vadd.f32 %v278_v62, %v3055_v21  ;;  %v3065_v16 = vunpack.c.l.bf16 %v3064_v12  ;;  %v3067_v33 = vunpack.c.l.bf16 %v3066_v19  ;;  %v3069_v2 = vunpack.c.l.bf16 %v3068_v17 }
  0xdc   : > { %v360_v23 = vadd.f32 %v359_v13, %v3057_v5  ;;  %v441_v35 = vadd.f32 %v440_v31, %v3059_v9  ;;  %v833_v26 = vadd.f32 %v832_v52, %v3061_v18  ;;  %v521_v45 = vadd.f32 %v520_v30, %v3063_v11  ;;  %v3092_v30 = vld [vmem:[#allocation90_spill] sm:$0xff]  ;;  %v3100_v18 = vld [vmem:[#allocation92_spill] sm:$0xff] }
  0xdd   : > { %v602_v7 = vadd.f32 %v601_v10, %v3065_v16  ;;  %v680_v24 = vadd.f32 %v3069_v2, %v3067_v33  ;;  %v775_v34 = vadd.f32 %v753_v60, %v694_v43  ;;  %v3071_v59 = vunpack.c.l.bf16 %v3070_v61  ;;  %v3094_v43 = vld [vmem:[#allocation72_spill] sm:$0xff]  ;;  %v3102_v11 = vld [vmem:[#allocation98_spill] sm:$0xff]  ;;  %v3105_v33 = vld [vmem:[#allocation75_spill] sm:$0xff] }
  0xde   : > { %v3073_v20 = vunpack.c.l.bf16 %v3072_v53  ;;  %v3075_v50 = vunpack.c.l.bf16 %v3074_v4  ;;  %v3077_v37 = vunpack.c.l.bf16 %v3076_v47  ;;  %v3079_v57 = vunpack.c.l.bf16 %v3078_v28  ;;  %v3115_v47 = vld [vmem:[#allocation91_spill] sm:$0xff] }
  0xdf   : > { %v280_v49 = vadd.f32 %v279_v39, %v3071_v59  ;;  %v3081_v15 = vunpack.c.l.bf16 %v3080_v25  ;;  %v3083_v32 = vunpack.c.l.bf16 %v3082_v48  ;;  %v3085_v3 = vunpack.c.l.bf16 %v3084_v58  ;;  %v3096_v39 = vld [vmem:[#allocation80_spill] sm:$0xff]  ;;  %v3117_v28 = vld [vmem:[#allocation87_spill] sm:$0xff]  ;;  %v3120_v48 = vld [vmem:[#allocation94_spill] sm:$0xff] }
  0xe0   : > { %v361_v54 = vadd.f32 %v360_v23, %v3073_v20  ;;  %v442_v22 = vadd.f32 %v441_v35, %v3075_v50  ;;  %v834_v46 = vadd.f32 %v833_v26, %v3077_v37  ;;  %v522_v44 = vadd.f32 %v521_v45, %v3079_v57  ;;  %v3098_v23 = vld [vmem:[#allocation85_spill] sm:$0xff]  ;;  %v3113_v50 = vld [vmem:[#allocation99_spill] sm:$0xff]  ;;  %v3119_v25 = vld [vmem:[#allocation100_spill] sm:$0xff] }
  0xe1   : > { %v603_v62 = vadd.f32 %v602_v7, %v3081_v15  ;;  %v681_v13 = vadd.f32 %v680_v24, %v3083_v32  ;;  %v281_v31 = vadd.f32 %v280_v49, %v3085_v3  ;;  %v3087_v1 = vunpack.c.l.bf16 %v3086_v36  ;;  %v3107_v24 = vld [vmem:[#allocation86_spill] sm:$0xff]  ;;  %v3111_v20 = vld [vmem:[#allocation93_spill] sm:$0xff]  ;;  %v3123_v36 = vld [vmem:[#allocation88_spill] sm:$0xff] }
  0xe2   : > { %v3089_v63 = vunpack.c.l.bf16 %v3088_v38  ;;  %v3091_v8 = vunpack.c.l.bf16 %v3090_v55  ;;  %v3093_v14 = vunpack.c.l.bf16 %v3092_v30  ;;  %v856_v10 = vadd.f32 %v834_v46, %v775_v34  ;;  %v3122_v3 = vld [vmem:[#allocation97_spill] sm:$0xff]  ;;  %v3126_v55 = vld [vmem:[#allocation95_spill] sm:$0xff] }
  0xe3   : > { %v362_v60 = vadd.f32 %v361_v54, %v3087_v1  ;;  %v3095_v42 = vunpack.c.l.bf16 %v3094_v43  ;;  %v3097_v40 = vunpack.c.l.bf16 %v3096_v39  ;;  %v3099_v51 = vunpack.c.l.bf16 %v3098_v23  ;;  %v3125_v38 = vld [vmem:[#allocation101_spill] sm:$0xff] }
  0xe4   : > { %v443_v52 = vadd.f32 %v442_v22, %v3089_v63  ;;  %v761_v41 = vadd.f32 %v3093_v14, %v3091_v8  ;;  %v810_v35 = vunpack.c.l.bf16 %v2419_v29  ;;  %v3101_v26 = vunpack.c.l.bf16 %v3100_v18  ;;  %v3109_v29 = vld [vmem:[#allocation83_spill] sm:$0xff]  ;;  %v1383_v18 = vld [vmem:[#allocation6] ss:$0 sm:$0xff] }
  0xe5   : > { %v523_v21 = vadd.f32 %v522_v44, %v3095_v42  ;;  %v604_v5 = vadd.f32 %v603_v62, %v3097_v40  ;;  %v682_v9 = vadd.f32 %v681_v13, %v3099_v51  ;;  %v372_v56 = vadd.f32 %v362_v60, %v281_v31 }
  0xe6   : > { %v762_v27 = vadd.f32 %v761_v41, %v3101_v26  ;;  %v3103_v45 = vunpack.c.l.bf16 %v3102_v11  ;;  %v3104_v12 = vunpack.c.l.bf16 %v2408_v0  ;;  %v814_v7 = vunpack.c.l.bf16 %v2422_v6  ;;  %v3116_v6 = vld [vmem:[#allocation96_spill] sm:$0xff]  ;;  %v1384_v11 = vld [vmem:[#allocation6 + $0x1] ss:$0 sm:$0xff] }
  0xe7   : > { %v894_v19 = vpack.c.bf16 %v856_v10, %v856_v10  ;;  %v3106_v17 = vunpack.c.l.bf16 %v3105_v33  ;;  %v3108_v34 = vunpack.c.l.bf16 %v3107_v24  ;;  %v453_v59 = vadd.f32 %v443_v52, %v372_v56  ;;  %v3128_v10 = vld [vmem:[#allocation102_spill] sm:$0xff] }
  0xe8   : > { %v842_v16 = vadd.f32 %v3104_v12, %v3103_v45  ;;  %v3110_v49 = vunpack.c.l.bf16 %v3109_v29  ;;  %v3112_v54 = vunpack.c.l.bf16 %v3111_v20  ;;  %v3114_v22 = vunpack.c.l.bf16 %v3113_v50  ;;  %v1388_v50 = vld [vmem:[#allocation6 + $0x5] ss:$0 sm:$0xff] }
  0xe9   : > { %v524_v2 = vadd.f32 %v523_v21, %v3106_v17  ;;  %v683_v61 = vadd.f32 %v682_v9, %v3108_v34  ;;  %v664_v37 = vunpack.c.l.bf16 %v3115_v47  ;;  %v741_v46 = vunpack.c.l.bf16 %v3116_v6  ;;  %1025 = vmatmul.mubr.bf16.vlgmr.msra.gmra.mxu0 %v894_v19  ;;  %v1385_v19 = vld [vmem:[#allocation6 + $0x2] ss:$0 sm:$0xff]  ;;  %v1386_v17 = vld [vmem:[#allocation6 + $0x3] ss:$0 sm:$0xff] }
  0xea   : > { %v605_v53 = vadd.f32 %v604_v5, %v3110_v49  ;;  %v763_v4 = vadd.f32 %v762_v27, %v3112_v54  ;;  %v843_v0 = vadd.f32 %v842_v16, %v3114_v22  ;;  %v3118_v57 = vunpack.c.l.bf16 %v3117_v28  ;;  %v1387_v54 = vld [vmem:[#allocation6 + $0x4] ss:$0 sm:$0xff] }
  0xeb   : > { %v818_v15 = vunpack.c.l.bf16 %v3119_v25  ;;  %v534_v62 = vadd.f32 %v524_v2, %v453_v59  ;;  %v3121_v32 = vunpack.c.l.bf16 %v3120_v48  ;;  %v745_v31 = vunpack.c.l.bf16 %v3122_v3 }
  0xec   : > { %v684_v44 = vadd.f32 %v683_v61, %v3118_v57  ;;  %v844_v58 = vadd.f32 %v843_v0, %v810_v35  ;;  %v3124_v1 = vunpack.c.l.bf16 %v3123_v36  ;;  %v822_v63 = vunpack.c.l.bf16 %v3125_v38 }
  0xed   : > { %v764_v13 = vadd.f32 %v763_v4, %v3121_v32  ;;  %v615_v52 = vadd.f32 %v605_v53, %v534_v62  ;;  %v3127_v8 = vunpack.c.l.bf16 %v3126_v55  ;;  %v826_v43 = vunpack.c.l.bf16 %v3128_v10 }
  0xee   : > { %v685_v60 = vadd.f32 %v684_v44, %v3124_v1  ;;  %v845_v14 = vadd.f32 %v844_v58, %v814_v7 }
  0xef   : > { %v765_v30 = vadd.f32 %v764_v13, %v3127_v8 }
  0xf0   : > { %v686_v41 = vadd.f32 %v685_v60, %v664_v37  ;;  %v846_v21 = vadd.f32 %v845_v14, %v818_v15 }
  0xf1   : > { %v766_v42 = vadd.f32 %v765_v30, %v741_v46 }
  0xf2   : > { %v696_v39 = vadd.f32 %v686_v41, %v615_v52  ;;  %v847_v5 = vadd.f32 %v846_v21, %v822_v63 }
  0xf3   : > { %v767_v40 = vadd.f32 %v766_v42, %v745_v31 }
  0xf4   : > { %v848_v51 = vadd.f32 %v847_v5, %v826_v43 }
  0xf5   : > { %v777_v23 = vadd.f32 %v767_v40, %v696_v39 }
  0xf7   : > { %v858_v9 = vadd.f32 %v848_v51, %v777_v23 }
  0xf9   : > { %v1056_v35 = vpack.c.bf16 %v858_v9, %v858_v9 }
  0xfb   : > { %1091 = vmatmul.mubr.bf16.vlgmr.msra.gmra.mxu1 %v1056_v35 }
 0x1a9   : > { %v1411_v56 = vpop.f32.mrf.mxu0 }
 0x1ab   : > { %v1412_v26 = vpop.f32.mrf.mxu0 }
 0x1ac   : > { %v1413_v27 = vadd.f32 %v1412_v26, %v1411_v56 }
 0x1ad   : > { %v1414_v45 = vpop.f32.mrf.mxu0 }
 0x1ae   : > { %v1036_v12 = vmul.f32 %v1413_v27, %v1383_v18 }
 0x1af   : > { %v1415_v16 = vpop.f32.mrf.mxu0 }
 0x1b0   : > { %v1041_v7 = vadd.f32 %v1384_v11, %v1036_v12 }
 0x1b2   : > { %v1042_v33 = vmax.f32 %v1041_v7, 0.0 }
 0x1b4   : > { %v1048_v2 = vmul.f32 %v1385_v19, %v1042_v33 }
 0x1b6   : > { %v1054_v24 = vadd.f32 %v1386_v17, %v1048_v2 }
 0x1b8   : > { %1055 = vst [vmem:[%s211_s24] sm:$0xff] %v1054_v24 }
 0x1bb   : > { %v1433_v34 = vpop.f32.mrf.mxu1 }
 0x1bd   : > { %v1434_v61 = vpop.f32.mrf.mxu1 }
 0x1be   : > { %v1435_v59 = vadd.f32 %v1434_v61, %v1433_v34 }
 0x1bf   : > { %v1436_v29 = vpop.f32.mrf.mxu1  ;;  %v1154_v47 = vld [vmem:[%s211_s24] sm:$0xff] (%p3129_p12) }
 0x1c0   : > { %v1098_v49 = vmul.f32 %v1435_v59, %v1383_v18  ;;  %1155 = vst [vmem:[%s1123_s4] sm:$0xff] (%p3129_p12), %v1154_v47 }
 0x1c1   : > { %v1437_v53 = vpop.f32.mrf.mxu1 }
 0x1c2   : > { %v1099_v20 = vadd.f32 %v1384_v11, %v1098_v49 }
 0x1c4   : > { %v1100_v4 = vmax.f32 %v1099_v20, 0.0 }
 0x1c6   : > { %v1106_v22 = vmul.f32 %v1387_v54, %v1100_v4  ;;  %1121 = sbr.rel (!%p3129_p12) target bundleno = 467 (0x1d3), region = 48 }
 0x1c8   : > { %v1112_v0 = vadd.f32 %v1388_v50, %v1106_v22 }
 0x1ca   : > { %1389 = vst [vmem:[%s211_s24 + $0x8] sm:$0xff] %v1112_v0 }
 0x1d1   : > { %v1156_v37 = vld [vmem:[%s211_s24 + $0x8] sm:$0xff] }
 0x1d2   : > { %1157 = vst [vmem:[%s1123_s4 + $0x10] sm:$0xff] %v1156_v37 }
 0x1d3 PF: > { %p14_p4 = scmp.ge.s32.totalorder %s1690_s17, 4   ;;  %s3130_s12 = smov %s1630_s13 }
 0x1d4   : > { %s3131_s13 = smov %s1634_s14  ;;  %s3132_s14 = smov %s1700_s20 }
 0x1d5   : > { %s3133_s15 = smov %s1690_s17  ;;  %16 = sbr.rel (!%p14_p4) target bundleno = 4 (0x4), region = 126 }
 0x1da   :  { %1173 = vsyncpa [#allocation3], 1 }
 0x1db   :  { %1175 = vsyncpa [#allocation3 + $0x1], 1 }
 0x1dc   :  { %1176 = vsyncpa [#allocation5], 1 }

</bundles_post_ra>
